<compile_context>
chip_gen: v6e
topology: v6e:2x2x1
jax: 0.10.0
libtpu: 0.0.40
codegen_flags: <defaults>
</compile_context>

<pallas_src>
import math
import functools

import jax
import jax.numpy as jnp
from jax.experimental import pallas as pl
from jax.experimental.pallas import tpu as pltpu

LOG2 = math.log(2.0)
_LANE = 128
_NOUT_PAD = 128                      # lane-dense per-tile output vector
_S_TARGET = 64                       # ~8192 lanes per grid step
_INPUT_VMEM_BUDGET = 20 * 1024 * 1024  # double-buffered input bytes budget


def _lse2(a, b):
    """logsumexp of two arrays: one exp + one log1p per element."""
    m = jnp.maximum(a, b)
    return m + jnp.log1p(jnp.exp(-jnp.abs(a - b)))


def _isfinite(x):
    # manual finite check (avoids relying on lax.is_finite lowering)
    return (x == x) & (jnp.abs(x) < jnp.inf)


def _laplace_kernel(*refs, n_pred, max_flow, hw, s_block, n_out_pad):
    # refs: flow_0..flow_{n-1} (B,2,S,128), info_0..info_{n-1} (B,3,S,128),
    #       gt (B,2,S,128), valid (B,S,128) f32, out (1,1,n_out_pad)
    flow_refs = refs[:n_pred]
    info_refs = refs[n_pred:2 * n_pred]
    gt_ref = refs[2 * n_pred]
    valid_ref = refs[2 * n_pred + 1]
    out_ref = refs[2 * n_pred + 2]

    t = pl.program_id(0)

    gt = gt_ref[...].astype(jnp.float32)          # (B, 2, S, 128)
    gt_x = gt[:, 0]                               # (B, S, 128)
    gt_y = gt[:, 1]
    valid = valid_ref[...]                        # (B, S, 128), f32

    # In-bounds mask over the flattened H*W axis. Handles both the lane pad
    # (HW -> multiple of 128, valid is zero there anyway) and a partial last
    # row-block whose out-of-range rows contain garbage.
    row = jax.lax.broadcasted_iota(jnp.int32, (s_block, _LANE), 0)
    lane = jax.lax.broadcasted_iota(jnp.int32, (s_block, _LANE), 1)
    flat = (t * s_block + row) * _LANE + lane
    in_bounds = flat < hw                         # (S, 128), broadcasts over B

    # |flow_gt| < max_flow  <=>  |flow_gt|^2 < max_flow^2 (saves a sqrt)
    mask = (((gt_x * gt_x + gt_y * gt_y) < max_flow * max_flow)
            & (valid > 0.5) & in_bounds)          # (B, S, 128) bool

    lane_idx = jax.lax.broadcasted_iota(jnp.int32, (1, n_out_pad), 1)
    out_vec = jnp.zeros((1, n_out_pad), jnp.float32)

    def put(vec, slot, scalar):                   # place a scalar at one lane
        return vec + jnp.where(lane_idx == slot, scalar, 0.0)

    # mask count (prediction-independent, computed once per tile)
    out_vec = put(out_vec, 2 * n_pred, jnp.sum(mask.astype(jnp.float32)))

    for p in range(n_pred):                       # static unroll over preds
        flow = flow_refs[p][...].astype(jnp.float32)   # (B, 2, S, 128)
        info = info_refs[p][...].astype(jnp.float32)   # (B, 3, S, 128)
        fx, fy = flow[:, 0], flow[:, 1]
        a0, a1, rb0 = info[:, 0], info[:, 1], info[:, 2]
        # raw_b channel 1 is clamp(x, 0, 0) == 0 => exp(-log_b1) == 1 and
        # term1_1 == a1 - log(2); that channel is never fetched.

        lb0 = jnp.clip(rb0, 0.0, 10.0)
        e0 = jnp.exp(-lb0)
        d0 = jnp.abs(gt_x - fx)
        d1 = jnp.abs(gt_y - fy)
        t10 = a0 - LOG2 - lb0
        t11 = a1 - LOG2

        lse_a = _lse2(a0, a1)                          # logsumexp(alpha, dim=1)
        nf0 = lse_a - _lse2(t10 - d0 * e0, t11 - d0)   # nf_loss channel 0
        nf1 = lse_a - _lse2(t10 - d1 * e0, t11 - d1)   # nf_loss channel 1

        fin0 = _isfinite(nf0) & mask
        fin1 = _isfinite(nf1) & mask
        nf_sum = jnp.sum(jnp.where(fin0, nf0, 0.0) + jnp.where(fin1, nf1, 0.0))
        cnt = jnp.sum(fin0.astype(jnp.float32) + fin1.astype(jnp.float32))

        out_vec = put(out_vec, p, nf_sum)
        out_vec = put(out_vec, n_pred + p, cnt)

    out_ref[...] = out_vec.reshape(out_ref.shape)      # single lane-dense store


def sequence_laplace_loss_pallas(flow_preds, info_preds, flow_gt, valid,
                                 max_flow, gamma=0.8):
    """Pallas version of sequence_laplace_loss (mask computed in-kernel)."""
    # gamma: the reference computes weights but multiplies each term by 1.0,
    # so the weights never affect the result.
    del gamma
    n_pred = len(flow_preds)
    B, _, H, W = flow_gt.shape
    HW = H * W

    hw_pad = -(-HW // _LANE) * _LANE
    rows = hw_pad // _LANE
    lane_pad = hw_pad - HW

    def _prep(x, c):
        x = x.reshape(B, c, HW)                   # pure reshape (no copy)
        if lane_pad:                              # only when HW % 128 != 0
            x = jnp.pad(x, ((0, 0), (0, 0), (0, lane_pad)))
        return x.reshape(B, c, rows, _LANE)       # sublane-dense 4D view

    flows = [_prep(f, 2) for f in flow_preds]     # native dtype (no astype)
    infos = [_prep(i, 4) for i in info_preds]
    gt = _prep(flow_gt, 2)

    v = valid.astype(jnp.float32).reshape(B, HW)  # tiny; cast is negligible
    if lane_pad:
        v = jnp.pad(v, ((0, 0), (0, lane_pad)))   # padded lanes -> invalid
    v = v.reshape(B, rows, _LANE)

    # ---- tile (S) selection: big tiles, VMEM-budgeted, >=2 tiles if possible
    in_bytes_per_row = _LANE * B * (
        sum(2 * f.dtype.itemsize for f in flow_preds)
        + sum(3 * i.dtype.itemsize for i in info_preds)
        + 2 * flow_gt.dtype.itemsize
        + 4)                                      # valid (f32)
    s_vmem = max(8, (_INPUT_VMEM_BUDGET // (2 * in_bytes_per_row)) // 8 * 8)
    s_cap = int(min(_S_TARGET, s_vmem))
    if rows <= 8:
        s_block = rows                            # full extent, single tile
    else:
        half = max(8, (rows // 2) // 8 * 8)       # keep >=2 tiles (v7x megacore)
        s_block = int(min(s_cap, half))
    num_tiles = -(-rows // s_block)

    n_out = 2 * n_pred + 1
    assert n_out <= _NOUT_PAD, "too many predictions for one output vector"

    kernel = functools.partial(
        _laplace_kernel, n_pred=n_pred, max_flow=float(max_flow),
        hw=HW, s_block=s_block, n_out_pad=_NOUT_PAD)

    in_specs = (
        [pl.BlockSpec((B, 2, s_block, _LANE), lambda t: (0, 0, t, 0))
         for _ in range(n_pred)]
        + [pl.BlockSpec((B, 3, s_block, _LANE), lambda t: (0, 0, t, 0))
           for _ in range(n_pred)]                # only 3 of 4 info channels
        + [pl.BlockSpec((B, 2, s_block, _LANE), lambda t: (0, 0, t, 0)),
           pl.BlockSpec((B, s_block, _LANE), lambda t: (0, t, 0))]
    )

    parts = pl.pallas_call(
        kernel,
        out_shape=jax.ShapeDtypeStruct((num_tiles, 1, _NOUT_PAD), jnp.float32),
        grid_spec=pltpu.PrefetchScalarGridSpec(
            num_scalar_prefetch=0,
            grid=(num_tiles,),
            in_specs=in_specs,
            out_specs=pl.BlockSpec((1, 1, _NOUT_PAD), lambda t: (t, 0, 0)),
        ),
        compiler_params=pltpu.CompilerParams(
            dimension_semantics=("parallel",),
            vmem_limit_bytes=32 * 1024 * 1024),
    )(*flows, *infos, gt, v)

    sums = jnp.sum(parts, axis=0).reshape(_NOUT_PAD)
    nf_sum = sums[:n_pred]
    cnt = sums[n_pred:2 * n_pred]
    mask_mean = sums[2 * n_pred] / float(B * H * W)

    # Same divide-by-zero hazard as the PyTorch reference (nf_loss[mask].mean()
    # of an empty selection) -- intentionally not guarded to preserve semantics.
    per_pred_mean = nf_sum / cnt
    loss = jnp.sum(per_pred_mean)
    # "if mask.float().mean() < 0.25: return 0" gate
    return jnp.where(mask_mean < 0.25, jnp.float32(0.0), loss)


def loss_func_forward(data_batch, training_output, crop_size=(16, 16)):
    """JAX/Pallas equivalent of loss_func.forward with conf_forward=True."""
    max_flow = (crop_size[0] * crop_size[1]) ** 0.5
    flow_true = data_batch['gt1']      # (B,2,H,W)
    valid = data_batch['mask']         # (B,1,H,W)

    flow_list = training_output['flow_predictions']
    info_list = training_output['info_predictions']

    loss = sequence_laplace_loss_pallas(flow_list, info_list, flow_true,
                                        valid, max_flow, gamma=0.8)
    loss = loss + 0.0 * training_output['auxiliary']
    # TODO(synk): infoNCE_lossfunc is not defined in the reference source; its
    # contribution is omitted.
    return loss


# ----------------------------- pure-JAX reference ---------------------------
def _reference_forward(data_batch, training_output, crop_size=(16, 16)):
    max_flow = (crop_size[0] * crop_size[1]) ** 0.5
    gt = data_batch['gt1'].astype(jnp.float32)
    valid = data_batch['mask'].astype(jnp.float32)
    mag = jnp.sqrt((gt ** 2).sum(axis=1, keepdims=True))
    mask1 = (mag < max_flow) & (valid > 0.5)                  # (B,1,H,W)
    mask = jnp.concatenate([mask1, mask1], axis=1)            # (B,2,H,W)

    total = jnp.float32(0.0)
    for flow, info in zip(training_output['flow_predictions'],
                          training_output['info_predictions']):
        flow = flow.astype(jnp.float32)
        info = info.astype(jnp.float32)
        alpha = info[:, :2]
        raw_b = info[:, 2:]
        lb0 = jnp.clip(raw_b[:, 0], 0.0, 10.0)
        lb1 = jnp.clip(raw_b[:, 1], 0.0, 0.0)
        log_b = jnp.stack([lb0, lb1], axis=1)
        term2 = jnp.abs(gt - flow)[:, :, None] * jnp.exp(-log_b)[:, None]
        term1 = alpha - math.log(2.0) - log_b
        nf = (jax.scipy.special.logsumexp(alpha, axis=1, keepdims=True)
              - jax.scipy.special.logsumexp(term1[:, None] - term2, axis=2))
        fin = jnp.isfinite(nf) & mask
        total = total + jnp.sum(jnp.where(fin, nf, 0.0)) / jnp.sum(fin)
    gate = jnp.mean(mask1.astype(jnp.float32)) < 0.25
    laplace = jnp.where(gate, 0.0, total)
    return laplace + 0.0 * training_output['auxiliary']


if __name__ == "__main__":
    key = jax.random.PRNGKey(0)
    B, H, W = 2, 16, 16
    N_PRED = 3
    crop_size = (16, 16)   # max_flow = 16

    keys = jax.random.split(key, 4 + 2 * N_PRED)
    flow_true = 3.0 * jax.random.normal(keys[0], (B, 2, H, W), jnp.float32)
    valid = (jax.random.uniform(keys[1], (B, 1, H, W)) > 0.1).astype(jnp.float32)
    auxiliary = jnp.float32(0.5)

    flow_preds = [jax.random.normal(keys[2 + i], (B, 2, H, W), jnp.float32)
                  for i in range(N_PRED)]
    info_preds = [jax.random.normal(keys[2 + N_PRED + i], (B, 4, H, W), jnp.float32)
                  for i in range(N_PRED)]

    data_batch = {'gt1': flow_true, 'mask': valid}
    training_output = {
        'flow_predictions': flow_preds,
        'info_predictions': info_preds,
        'auxiliary': auxiliary,
        'corr': None,   # only used by infoNCE_lossfunc (not defined in source)
    }

    out = loss_func_forward(data_batch, training_output, crop_size)
    out = jax.block_until_ready(out)

    ref = _reference_forward(data_batch, training_output, crop_size)
    ref = jax.block_until_ready(ref)

    assert jnp.isfinite(out), "kernel produced non-finite loss"
    tol = 1e-3 * max(1.0, abs(float(ref)))
    assert abs(float(out) - float(ref)) < tol, (float(out), float(ref))
    print("KERNEL_OK")
</pallas_src>

<mosaic_0001>
module attributes {stable_mosaic.version = 11 : i64} {
  func.func @_laplace_kernel(%arg0: i32, %arg1: memref<2x2x2x128xf32, #tpu.memory_space<vmem>>, %arg2: memref<2x2x2x128xf32, #tpu.memory_space<vmem>>, %arg3: memref<2x2x2x128xf32, #tpu.memory_space<vmem>>, %arg4: memref<2x3x2x128xf32, #tpu.memory_space<vmem>>, %arg5: memref<2x3x2x128xf32, #tpu.memory_space<vmem>>, %arg6: memref<2x3x2x128xf32, #tpu.memory_space<vmem>>, %arg7: memref<2x2x2x128xf32, #tpu.memory_space<vmem>>, %arg8: memref<2x2x128xf32, #tpu.memory_space<vmem>>, %arg9: memref<1x1x128xf32, #tpu.memory_space<vmem>>) attributes {dimension_semantics = [#tpu.dimension_semantics<parallel>], iteration_bounds = array<i64: 1>, scalar_prefetch = 0 : i64, scratch_operands = 0 : i64, tpu.core_type = #tpu.core_type<tc>, window_params = [{transform_indices = @transform_0, window_bounds = array<i64: 2, 2, 2, 128>}, {transform_indices = @transform_1, window_bounds = array<i64: 2, 2, 2, 128>}, {transform_indices = @transform_2, window_bounds = array<i64: 2, 2, 2, 128>}, {transform_indices = @transform_3, window_bounds = array<i64: 2, 3, 2, 128>}, {transform_indices = @transform_4, window_bounds = array<i64: 2, 3, 2, 128>}, {transform_indices = @transform_5, window_bounds = array<i64: 2, 3, 2, 128>}, {transform_indices = @transform_6, window_bounds = array<i64: 2, 2, 2, 128>}, {transform_indices = @transform_7, window_bounds = array<i64: 2, 2, 128>}, {transform_indices = @transform_8, window_bounds = array<i64: 1, 1, 128>}]} {
    %c0 = arith.constant 0 : index
    %c0_0 = arith.constant 0 : index
    %c0_1 = arith.constant 0 : index
    %c0_2 = arith.constant 0 : index
    %0 = vector.load %arg7[%c0, %c0_0, %c0_1, %c0_2] : memref<2x2x2x128xf32, #tpu.memory_space<vmem>>, vector<2x2x2x128xf32>
    %1 = vector.extract_strided_slice %0 {offsets = [0, 0, 0, 0], sizes = [2, 1, 2, 128], strides = [1, 1, 1, 1]} : vector<2x2x2x128xf32> to vector<2x1x2x128xf32>
    %2 = vector.shape_cast %1 : vector<2x1x2x128xf32> to vector<2x2x128xf32>
    %3 = vector.extract_strided_slice %0 {offsets = [0, 1, 0, 0], sizes = [2, 1, 2, 128], strides = [1, 1, 1, 1]} : vector<2x2x2x128xf32> to vector<2x1x2x128xf32>
    %4 = vector.shape_cast %3 : vector<2x1x2x128xf32> to vector<2x2x128xf32>
    %c0_3 = arith.constant 0 : index
    %c0_4 = arith.constant 0 : index
    %c0_5 = arith.constant 0 : index
    %5 = vector.load %arg8[%c0_3, %c0_4, %c0_5] : memref<2x2x128xf32, #tpu.memory_space<vmem>>, vector<2x2x128xf32>
    %6 = tpu.iota {dimensions = array<i32: 0>} : vector<2x128xi32>
    %7 = tpu.iota {dimensions = array<i32: 1>} : vector<2x128xi32>
    %c2_i32 = arith.constant 2 : i32
    %8 = arith.muli %arg0, %c2_i32 : i32
    %9 = vector.broadcast %8 : i32 to vector<2x128xi32>
    %10 = arith.addi %9, %6 : vector<2x128xi32>
    %c128_i32 = arith.constant 128 : i32
    %11 = vector.broadcast %c128_i32 : i32 to vector<2x128xi32>
    %12 = arith.muli %10, %11 : vector<2x128xi32>
    %13 = arith.addi %12, %7 : vector<2x128xi32>
    %c256_i32 = arith.constant 256 : i32
    %14 = vector.broadcast %c256_i32 : i32 to vector<2x128xi32>
    %15 = arith.cmpi slt, %13, %14 : vector<2x128xi32>
    %16 = arith.mulf %2, %2 : vector<2x2x128xf32>
    %17 = arith.mulf %4, %4 : vector<2x2x128xf32>
    %18 = arith.addf %16, %17 : vector<2x2x128xf32>
    %cst = arith.constant 2.560000e+02 : f32
    %19 = vector.broadcast %cst : f32 to vector<2x2x128xf32>
    %20 = arith.cmpf olt, %18, %19 : vector<2x2x128xf32>
    %cst_6 = arith.constant 5.000000e-01 : f32
    %21 = vector.broadcast %cst_6 : f32 to vector<2x2x128xf32>
    %22 = arith.cmpf ogt, %5, %21 : vector<2x2x128xf32>
    %23 = arith.andi %20, %22 : vector<2x2x128xi1>
    %24 = vector.shape_cast %15 : vector<2x128xi1> to vector<1x2x128xi1>
    %25 = vector.broadcast %24 : vector<1x2x128xi1> to vector<2x2x128xi1>
    %26 = arith.andi %23, %25 : vector<2x2x128xi1>
    %27 = tpu.iota {dimensions = array<i32: 1>} : vector<1x128xi32>
    %cst_7 = arith.constant 0.000000e+00 : f32
    %28 = vector.broadcast %cst_7 : f32 to vector<1x128xf32>
    %29 = arith.extui %26 : vector<2x2x128xi1> to vector<2x2x128xi32>
    %30 = arith.sitofp %29 : vector<2x2x128xi32> to vector<2x2x128xf32>
    %31 = vector.shape_cast %30 : vector<2x2x128xf32> to vector<1x2x2x128xf32>
    %cst_8 = arith.constant dense<0.000000e+00> : vector<1xf32>
    %32 = vector.multi_reduction <add>, %31, %cst_8 [1, 2, 3] : vector<1x2x2x128xf32> to vector<1xf32>
    %33 = vector.shape_cast %32 : vector<1xf32> to vector<1x1x1x1xf32>
    %34 = vector.extract %33[0, 0, 0, 0] : f32 from vector<1x1x1x1xf32>
    %c6_i32 = arith.constant 6 : i32
    %35 = vector.broadcast %c6_i32 : i32 to vector<1x128xi32>
    %36 = arith.cmpi eq, %27, %35 : vector<1x128xi32>
    %cst_9 = arith.constant 0.000000e+00 : f32
    %37 = vector.broadcast %34 : f32 to vector<1x128xf32>
    %38 = vector.broadcast %cst_9 : f32 to vector<1x128xf32>
    %39 = arith.select %36, %37, %38 : vector<1x128xi1>, vector<1x128xf32>
    %40 = arith.addf %28, %39 : vector<1x128xf32>
    %c0_10 = arith.constant 0 : index
    %c0_11 = arith.constant 0 : index
    %c0_12 = arith.constant 0 : index
    %c0_13 = arith.constant 0 : index
    %41 = vector.load %arg1[%c0_10, %c0_11, %c0_12, %c0_13] : memref<2x2x2x128xf32, #tpu.memory_space<vmem>>, vector<2x2x2x128xf32>
    %c0_14 = arith.constant 0 : index
    %c0_15 = arith.constant 0 : index
    %c0_16 = arith.constant 0 : index
    %c0_17 = arith.constant 0 : index
    %42 = vector.load %arg4[%c0_14, %c0_15, %c0_16, %c0_17] : memref<2x3x2x128xf32, #tpu.memory_space<vmem>>, vector<2x3x2x128xf32>
    %43 = vector.extract_strided_slice %41 {offsets = [0, 0, 0, 0], sizes = [2, 1, 2, 128], strides = [1, 1, 1, 1]} : vector<2x2x2x128xf32> to vector<2x1x2x128xf32>
    %44 = vector.shape_cast %43 : vector<2x1x2x128xf32> to vector<2x2x128xf32>
    %45 = vector.extract_strided_slice %41 {offsets = [0, 1, 0, 0], sizes = [2, 1, 2, 128], strides = [1, 1, 1, 1]} : vector<2x2x2x128xf32> to vector<2x1x2x128xf32>
    %46 = vector.shape_cast %45 : vector<2x1x2x128xf32> to vector<2x2x128xf32>
    %47 = vector.extract_strided_slice %42 {offsets = [0, 0, 0, 0], sizes = [2, 1, 2, 128], strides = [1, 1, 1, 1]} : vector<2x3x2x128xf32> to vector<2x1x2x128xf32>
    %48 = vector.shape_cast %47 : vector<2x1x2x128xf32> to vector<2x2x128xf32>
    %49 = vector.extract_strided_slice %42 {offsets = [0, 1, 0, 0], sizes = [2, 1, 2, 128], strides = [1, 1, 1, 1]} : vector<2x3x2x128xf32> to vector<2x1x2x128xf32>
    %50 = vector.shape_cast %49 : vector<2x1x2x128xf32> to vector<2x2x128xf32>
    %51 = vector.extract_strided_slice %42 {offsets = [0, 2, 0, 0], sizes = [2, 1, 2, 128], strides = [1, 1, 1, 1]} : vector<2x3x2x128xf32> to vector<2x1x2x128xf32>
    %52 = vector.shape_cast %51 : vector<2x1x2x128xf32> to vector<2x2x128xf32>
    %cst_18 = arith.constant 0.000000e+00 : f32
    %cst_19 = arith.constant 1.000000e+01 : f32
    %53 = vector.broadcast %cst_18 : f32 to vector<2x2x128xf32>
    %54 = arith.maximumf %53, %52 : vector<2x2x128xf32>
    %55 = vector.broadcast %cst_19 : f32 to vector<2x2x128xf32>
    %56 = arith.minimumf %55, %54 : vector<2x2x128xf32>
    %cst_20 = arith.constant 0.000000e+00 : f32
    %57 = vector.broadcast %cst_20 : f32 to vector<2x2x128xf32>
    %58 = arith.subf %57, %56 : vector<2x2x128xf32>
    %59 = math.exp %58 : vector<2x2x128xf32>
    %60 = arith.subf %2, %44 : vector<2x2x128xf32>
    %61 = math.absf %60 : vector<2x2x128xf32>
    %62 = arith.subf %4, %46 : vector<2x2x128xf32>
    %63 = math.absf %62 : vector<2x2x128xf32>
    %cst_21 = arith.constant 0.693147182 : f32
    %64 = vector.broadcast %cst_21 : f32 to vector<2x2x128xf32>
    %65 = arith.subf %48, %64 : vector<2x2x128xf32>
    %66 = arith.subf %65, %56 : vector<2x2x128xf32>
    %cst_22 = arith.constant 0.693147182 : f32
    %67 = vector.broadcast %cst_22 : f32 to vector<2x2x128xf32>
    %68 = arith.subf %50, %67 : vector<2x2x128xf32>
    %69 = arith.maximumf %48, %50 : vector<2x2x128xf32>
    %70 = arith.subf %48, %50 : vector<2x2x128xf32>
    %71 = math.absf %70 : vector<2x2x128xf32>
    %cst_23 = arith.constant 0.000000e+00 : f32
    %72 = vector.broadcast %cst_23 : f32 to vector<2x2x128xf32>
    %73 = arith.subf %72, %71 : vector<2x2x128xf32>
    %74 = math.exp %73 : vector<2x2x128xf32>
    %75 = math.log1p %74 : vector<2x2x128xf32>
    %76 = arith.addf %69, %75 : vector<2x2x128xf32>
    %77 = arith.mulf %61, %59 : vector<2x2x128xf32>
    %78 = arith.subf %66, %77 : vector<2x2x128xf32>
    %79 = arith.subf %68, %61 : vector<2x2x128xf32>
    %80 = arith.maximumf %78, %79 : vector<2x2x128xf32>
    %81 = arith.subf %78, %79 : vector<2x2x128xf32>
    %82 = math.absf %81 : vector<2x2x128xf32>
    %cst_24 = arith.constant 0.000000e+00 : f32
    %83 = vector.broadcast %cst_24 : f32 to vector<2x2x128xf32>
    %84 = arith.subf %83, %82 : vector<2x2x128xf32>
    %85 = math.exp %84 : vector<2x2x128xf32>
    %86 = math.log1p %85 : vector<2x2x128xf32>
    %87 = arith.addf %80, %86 : vector<2x2x128xf32>
    %88 = arith.subf %76, %87 : vector<2x2x128xf32>
    %89 = arith.mulf %63, %59 : vector<2x2x128xf32>
    %90 = arith.subf %66, %89 : vector<2x2x128xf32>
    %91 = arith.subf %68, %63 : vector<2x2x128xf32>
    %92 = arith.maximumf %90, %91 : vector<2x2x128xf32>
    %93 = arith.subf %90, %91 : vector<2x2x128xf32>
    %94 = math.absf %93 : vector<2x2x128xf32>
    %cst_25 = arith.constant 0.000000e+00 : f32
    %95 = vector.broadcast %cst_25 : f32 to vector<2x2x128xf32>
    %96 = arith.subf %95, %94 : vector<2x2x128xf32>
    %97 = math.exp %96 : vector<2x2x128xf32>
    %98 = math.log1p %97 : vector<2x2x128xf32>
    %99 = arith.addf %92, %98 : vector<2x2x128xf32>
    %100 = arith.subf %76, %99 : vector<2x2x128xf32>
    %101 = arith.cmpf oeq, %88, %88 : vector<2x2x128xf32>
    %102 = math.absf %88 : vector<2x2x128xf32>
    %cst_26 = arith.constant 0x7F800000 : f32
    %103 = vector.broadcast %cst_26 : f32 to vector<2x2x128xf32>
    %104 = arith.cmpf olt, %102, %103 : vector<2x2x128xf32>
    %105 = arith.andi %101, %104 : vector<2x2x128xi1>
    %106 = arith.andi %105, %26 : vector<2x2x128xi1>
    %107 = arith.cmpf oeq, %100, %100 : vector<2x2x128xf32>
    %108 = math.absf %100 : vector<2x2x128xf32>
    %cst_27 = arith.constant 0x7F800000 : f32
    %109 = vector.broadcast %cst_27 : f32 to vector<2x2x128xf32>
    %110 = arith.cmpf olt, %108, %109 : vector<2x2x128xf32>
    %111 = arith.andi %107, %110 : vector<2x2x128xi1>
    %112 = arith.andi %111, %26 : vector<2x2x128xi1>
    %cst_28 = arith.constant 0.000000e+00 : f32
    %113 = vector.broadcast %cst_28 : f32 to vector<2x2x128xf32>
    %114 = arith.select %106, %88, %113 : vector<2x2x128xi1>, vector<2x2x128xf32>
    %cst_29 = arith.constant 0.000000e+00 : f32
    %115 = vector.broadcast %cst_29 : f32 to vector<2x2x128xf32>
    %116 = arith.select %112, %100, %115 : vector<2x2x128xi1>, vector<2x2x128xf32>
    %117 = arith.addf %114, %116 : vector<2x2x128xf32>
    %118 = vector.shape_cast %117 : vector<2x2x128xf32> to vector<1x2x2x128xf32>
    %cst_30 = arith.constant dense<0.000000e+00> : vector<1xf32>
    %119 = vector.multi_reduction <add>, %118, %cst_30 [1, 2, 3] : vector<1x2x2x128xf32> to vector<1xf32>
    %120 = vector.shape_cast %119 : vector<1xf32> to vector<1x1x1x1xf32>
    %121 = vector.extract %120[0, 0, 0, 0] : f32 from vector<1x1x1x1xf32>
    %122 = arith.extui %106 : vector<2x2x128xi1> to vector<2x2x128xi32>
    %123 = arith.sitofp %122 : vector<2x2x128xi32> to vector<2x2x128xf32>
    %124 = arith.extui %112 : vector<2x2x128xi1> to vector<2x2x128xi32>
    %125 = arith.sitofp %124 : vector<2x2x128xi32> to vector<2x2x128xf32>
    %126 = arith.addf %123, %125 : vector<2x2x128xf32>
    %127 = vector.shape_cast %126 : vector<2x2x128xf32> to vector<1x2x2x128xf32>
    %cst_31 = arith.constant dense<0.000000e+00> : vector<1xf32>
    %128 = vector.multi_reduction <add>, %127, %cst_31 [1, 2, 3] : vector<1x2x2x128xf32> to vector<1xf32>
    %129 = vector.shape_cast %128 : vector<1xf32> to vector<1x1x1x1xf32>
    %130 = vector.extract %129[0, 0, 0, 0] : f32 from vector<1x1x1x1xf32>
    %c0_i32 = arith.constant 0 : i32
    %131 = vector.broadcast %c0_i32 : i32 to vector<1x128xi32>
    %132 = arith.cmpi eq, %27, %131 : vector<1x128xi32>
    %cst_32 = arith.constant 0.000000e+00 : f32
    %133 = vector.broadcast %121 : f32 to vector<1x128xf32>
    %134 = vector.broadcast %cst_32 : f32 to vector<1x128xf32>
    %135 = arith.select %132, %133, %134 : vector<1x128xi1>, vector<1x128xf32>
    %136 = arith.addf %40, %135 : vector<1x128xf32>
    %c3_i32 = arith.constant 3 : i32
    %137 = vector.broadcast %c3_i32 : i32 to vector<1x128xi32>
    %138 = arith.cmpi eq, %27, %137 : vector<1x128xi32>
    %cst_33 = arith.constant 0.000000e+00 : f32
    %139 = vector.broadcast %130 : f32 to vector<1x128xf32>
    %140 = vector.broadcast %cst_33 : f32 to vector<1x128xf32>
    %141 = arith.select %138, %139, %140 : vector<1x128xi1>, vector<1x128xf32>
    %142 = arith.addf %136, %141 : vector<1x128xf32>
    %c0_34 = arith.constant 0 : index
    %c0_35 = arith.constant 0 : index
    %c0_36 = arith.constant 0 : index
    %c0_37 = arith.constant 0 : index
    %143 = vector.load %arg2[%c0_34, %c0_35, %c0_36, %c0_37] : memref<2x2x2x128xf32, #tpu.memory_space<vmem>>, vector<2x2x2x128xf32>
    %c0_38 = arith.constant 0 : index
    %c0_39 = arith.constant 0 : index
    %c0_40 = arith.constant 0 : index
    %c0_41 = arith.constant 0 : index
    %144 = vector.load %arg5[%c0_38, %c0_39, %c0_40, %c0_41] : memref<2x3x2x128xf32, #tpu.memory_space<vmem>>, vector<2x3x2x128xf32>
    %145 = vector.extract_strided_slice %143 {offsets = [0, 0, 0, 0], sizes = [2, 1, 2, 128], strides = [1, 1, 1, 1]} : vector<2x2x2x128xf32> to vector<2x1x2x128xf32>
    %146 = vector.shape_cast %145 : vector<2x1x2x128xf32> to vector<2x2x128xf32>
    %147 = vector.extract_strided_slice %143 {offsets = [0, 1, 0, 0], sizes = [2, 1, 2, 128], strides = [1, 1, 1, 1]} : vector<2x2x2x128xf32> to vector<2x1x2x128xf32>
    %148 = vector.shape_cast %147 : vector<2x1x2x128xf32> to vector<2x2x128xf32>
    %149 = vector.extract_strided_slice %144 {offsets = [0, 0, 0, 0], sizes = [2, 1, 2, 128], strides = [1, 1, 1, 1]} : vector<2x3x2x128xf32> to vector<2x1x2x128xf32>
    %150 = vector.shape_cast %149 : vector<2x1x2x128xf32> to vector<2x2x128xf32>
    %151 = vector.extract_strided_slice %144 {offsets = [0, 1, 0, 0], sizes = [2, 1, 2, 128], strides = [1, 1, 1, 1]} : vector<2x3x2x128xf32> to vector<2x1x2x128xf32>
    %152 = vector.shape_cast %151 : vector<2x1x2x128xf32> to vector<2x2x128xf32>
    %153 = vector.extract_strided_slice %144 {offsets = [0, 2, 0, 0], sizes = [2, 1, 2, 128], strides = [1, 1, 1, 1]} : vector<2x3x2x128xf32> to vector<2x1x2x128xf32>
    %154 = vector.shape_cast %153 : vector<2x1x2x128xf32> to vector<2x2x128xf32>
    %cst_42 = arith.constant 0.000000e+00 : f32
    %cst_43 = arith.constant 1.000000e+01 : f32
    %155 = vector.broadcast %cst_42 : f32 to vector<2x2x128xf32>
    %156 = arith.maximumf %155, %154 : vector<2x2x128xf32>
    %157 = vector.broadcast %cst_43 : f32 to vector<2x2x128xf32>
    %158 = arith.minimumf %157, %156 : vector<2x2x128xf32>
    %cst_44 = arith.constant 0.000000e+00 : f32
    %159 = vector.broadcast %cst_44 : f32 to vector<2x2x128xf32>
    %160 = arith.subf %159, %158 : vector<2x2x128xf32>
    %161 = math.exp %160 : vector<2x2x128xf32>
    %162 = arith.subf %2, %146 : vector<2x2x128xf32>
    %163 = math.absf %162 : vector<2x2x128xf32>
    %164 = arith.subf %4, %148 : vector<2x2x128xf32>
    %165 = math.absf %164 : vector<2x2x128xf32>
    %cst_45 = arith.constant 0.693147182 : f32
    %166 = vector.broadcast %cst_45 : f32 to vector<2x2x128xf32>
    %167 = arith.subf %150, %166 : vector<2x2x128xf32>
    %168 = arith.subf %167, %158 : vector<2x2x128xf32>
    %cst_46 = arith.constant 0.693147182 : f32
    %169 = vector.broadcast %cst_46 : f32 to vector<2x2x128xf32>
    %170 = arith.subf %152, %169 : vector<2x2x128xf32>
    %171 = arith.maximumf %150, %152 : vector<2x2x128xf32>
    %172 = arith.subf %150, %152 : vector<2x2x128xf32>
    %173 = math.absf %172 : vector<2x2x128xf32>
    %cst_47 = arith.constant 0.000000e+00 : f32
    %174 = vector.broadcast %cst_47 : f32 to vector<2x2x128xf32>
    %175 = arith.subf %174, %173 : vector<2x2x128xf32>
    %176 = math.exp %175 : vector<2x2x128xf32>
    %177 = math.log1p %176 : vector<2x2x128xf32>
    %178 = arith.addf %171, %177 : vector<2x2x128xf32>
    %179 = arith.mulf %163, %161 : vector<2x2x128xf32>
    %180 = arith.subf %168, %179 : vector<2x2x128xf32>
    %181 = arith.subf %170, %163 : vector<2x2x128xf32>
    %182 = arith.maximumf %180, %181 : vector<2x2x128xf32>
    %183 = arith.subf %180, %181 : vector<2x2x128xf32>
    %184 = math.absf %183 : vector<2x2x128xf32>
    %cst_48 = arith.constant 0.000000e+00 : f32
    %185 = vector.broadcast %cst_48 : f32 to vector<2x2x128xf32>
    %186 = arith.subf %185, %184 : vector<2x2x128xf32>
    %187 = math.exp %186 : vector<2x2x128xf32>
    %188 = math.log1p %187 : vector<2x2x128xf32>
    %189 = arith.addf %182, %188 : vector<2x2x128xf32>
    %190 = arith.subf %178, %189 : vector<2x2x128xf32>
    %191 = arith.mulf %165, %161 : vector<2x2x128xf32>
    %192 = arith.subf %168, %191 : vector<2x2x128xf32>
    %193 = arith.subf %170, %165 : vector<2x2x128xf32>
    %194 = arith.maximumf %192, %193 : vector<2x2x128xf32>
    %195 = arith.subf %192, %193 : vector<2x2x128xf32>
    %196 = math.absf %195 : vector<2x2x128xf32>
    %cst_49 = arith.constant 0.000000e+00 : f32
    %197 = vector.broadcast %cst_49 : f32 to vector<2x2x128xf32>
    %198 = arith.subf %197, %196 : vector<2x2x128xf32>
    %199 = math.exp %198 : vector<2x2x128xf32>
    %200 = math.log1p %199 : vector<2x2x128xf32>
    %201 = arith.addf %194, %200 : vector<2x2x128xf32>
    %202 = arith.subf %178, %201 : vector<2x2x128xf32>
    %203 = arith.cmpf oeq, %190, %190 : vector<2x2x128xf32>
    %204 = math.absf %190 : vector<2x2x128xf32>
    %cst_50 = arith.constant 0x7F800000 : f32
    %205 = vector.broadcast %cst_50 : f32 to vector<2x2x128xf32>
    %206 = arith.cmpf olt, %204, %205 : vector<2x2x128xf32>
    %207 = arith.andi %203, %206 : vector<2x2x128xi1>
    %208 = arith.andi %207, %26 : vector<2x2x128xi1>
    %209 = arith.cmpf oeq, %202, %202 : vector<2x2x128xf32>
    %210 = math.absf %202 : vector<2x2x128xf32>
    %cst_51 = arith.constant 0x7F800000 : f32
    %211 = vector.broadcast %cst_51 : f32 to vector<2x2x128xf32>
    %212 = arith.cmpf olt, %210, %211 : vector<2x2x128xf32>
    %213 = arith.andi %209, %212 : vector<2x2x128xi1>
    %214 = arith.andi %213, %26 : vector<2x2x128xi1>
    %cst_52 = arith.constant 0.000000e+00 : f32
    %215 = vector.broadcast %cst_52 : f32 to vector<2x2x128xf32>
    %216 = arith.select %208, %190, %215 : vector<2x2x128xi1>, vector<2x2x128xf32>
    %cst_53 = arith.constant 0.000000e+00 : f32
    %217 = vector.broadcast %cst_53 : f32 to vector<2x2x128xf32>
    %218 = arith.select %214, %202, %217 : vector<2x2x128xi1>, vector<2x2x128xf32>
    %219 = arith.addf %216, %218 : vector<2x2x128xf32>
    %220 = vector.shape_cast %219 : vector<2x2x128xf32> to vector<1x2x2x128xf32>
    %cst_54 = arith.constant dense<0.000000e+00> : vector<1xf32>
    %221 = vector.multi_reduction <add>, %220, %cst_54 [1, 2, 3] : vector<1x2x2x128xf32> to vector<1xf32>
    %222 = vector.shape_cast %221 : vector<1xf32> to vector<1x1x1x1xf32>
    %223 = vector.extract %222[0, 0, 0, 0] : f32 from vector<1x1x1x1xf32>
    %224 = arith.extui %208 : vector<2x2x128xi1> to vector<2x2x128xi32>
    %225 = arith.sitofp %224 : vector<2x2x128xi32> to vector<2x2x128xf32>
    %226 = arith.extui %214 : vector<2x2x128xi1> to vector<2x2x128xi32>
    %227 = arith.sitofp %226 : vector<2x2x128xi32> to vector<2x2x128xf32>
    %228 = arith.addf %225, %227 : vector<2x2x128xf32>
    %229 = vector.shape_cast %228 : vector<2x2x128xf32> to vector<1x2x2x128xf32>
    %cst_55 = arith.constant dense<0.000000e+00> : vector<1xf32>
    %230 = vector.multi_reduction <add>, %229, %cst_55 [1, 2, 3] : vector<1x2x2x128xf32> to vector<1xf32>
    %231 = vector.shape_cast %230 : vector<1xf32> to vector<1x1x1x1xf32>
    %232 = vector.extract %231[0, 0, 0, 0] : f32 from vector<1x1x1x1xf32>
    %c1_i32 = arith.constant 1 : i32
    %233 = vector.broadcast %c1_i32 : i32 to vector<1x128xi32>
    %234 = arith.cmpi eq, %27, %233 : vector<1x128xi32>
    %cst_56 = arith.constant 0.000000e+00 : f32
    %235 = vector.broadcast %223 : f32 to vector<1x128xf32>
    %236 = vector.broadcast %cst_56 : f32 to vector<1x128xf32>
    %237 = arith.select %234, %235, %236 : vector<1x128xi1>, vector<1x128xf32>
    %238 = arith.addf %142, %237 : vector<1x128xf32>
    %c4_i32 = arith.constant 4 : i32
    %239 = vector.broadcast %c4_i32 : i32 to vector<1x128xi32>
    %240 = arith.cmpi eq, %27, %239 : vector<1x128xi32>
    %cst_57 = arith.constant 0.000000e+00 : f32
    %241 = vector.broadcast %232 : f32 to vector<1x128xf32>
    %242 = vector.broadcast %cst_57 : f32 to vector<1x128xf32>
    %243 = arith.select %240, %241, %242 : vector<1x128xi1>, vector<1x128xf32>
    %244 = arith.addf %238, %243 : vector<1x128xf32>
    %c0_58 = arith.constant 0 : index
    %c0_59 = arith.constant 0 : index
    %c0_60 = arith.constant 0 : index
    %c0_61 = arith.constant 0 : index
    %245 = vector.load %arg3[%c0_58, %c0_59, %c0_60, %c0_61] : memref<2x2x2x128xf32, #tpu.memory_space<vmem>>, vector<2x2x2x128xf32>
    %c0_62 = arith.constant 0 : index
    %c0_63 = arith.constant 0 : index
    %c0_64 = arith.constant 0 : index
    %c0_65 = arith.constant 0 : index
    %246 = vector.load %arg6[%c0_62, %c0_63, %c0_64, %c0_65] : memref<2x3x2x128xf32, #tpu.memory_space<vmem>>, vector<2x3x2x128xf32>
    %247 = vector.extract_strided_slice %245 {offsets = [0, 0, 0, 0], sizes = [2, 1, 2, 128], strides = [1, 1, 1, 1]} : vector<2x2x2x128xf32> to vector<2x1x2x128xf32>
    %248 = vector.shape_cast %247 : vector<2x1x2x128xf32> to vector<2x2x128xf32>
    %249 = vector.extract_strided_slice %245 {offsets = [0, 1, 0, 0], sizes = [2, 1, 2, 128], strides = [1, 1, 1, 1]} : vector<2x2x2x128xf32> to vector<2x1x2x128xf32>
    %250 = vector.shape_cast %249 : vector<2x1x2x128xf32> to vector<2x2x128xf32>
    %251 = vector.extract_strided_slice %246 {offsets = [0, 0, 0, 0], sizes = [2, 1, 2, 128], strides = [1, 1, 1, 1]} : vector<2x3x2x128xf32> to vector<2x1x2x128xf32>
    %252 = vector.shape_cast %251 : vector<2x1x2x128xf32> to vector<2x2x128xf32>
    %253 = vector.extract_strided_slice %246 {offsets = [0, 1, 0, 0], sizes = [2, 1, 2, 128], strides = [1, 1, 1, 1]} : vector<2x3x2x128xf32> to vector<2x1x2x128xf32>
    %254 = vector.shape_cast %253 : vector<2x1x2x128xf32> to vector<2x2x128xf32>
    %255 = vector.extract_strided_slice %246 {offsets = [0, 2, 0, 0], sizes = [2, 1, 2, 128], strides = [1, 1, 1, 1]} : vector<2x3x2x128xf32> to vector<2x1x2x128xf32>
    %256 = vector.shape_cast %255 : vector<2x1x2x128xf32> to vector<2x2x128xf32>
    %cst_66 = arith.constant 0.000000e+00 : f32
    %cst_67 = arith.constant 1.000000e+01 : f32
    %257 = vector.broadcast %cst_66 : f32 to vector<2x2x128xf32>
    %258 = arith.maximumf %257, %256 : vector<2x2x128xf32>
    %259 = vector.broadcast %cst_67 : f32 to vector<2x2x128xf32>
    %260 = arith.minimumf %259, %258 : vector<2x2x128xf32>
    %cst_68 = arith.constant 0.000000e+00 : f32
    %261 = vector.broadcast %cst_68 : f32 to vector<2x2x128xf32>
    %262 = arith.subf %261, %260 : vector<2x2x128xf32>
    %263 = math.exp %262 : vector<2x2x128xf32>
    %264 = arith.subf %2, %248 : vector<2x2x128xf32>
    %265 = math.absf %264 : vector<2x2x128xf32>
    %266 = arith.subf %4, %250 : vector<2x2x128xf32>
    %267 = math.absf %266 : vector<2x2x128xf32>
    %cst_69 = arith.constant 0.693147182 : f32
    %268 = vector.broadcast %cst_69 : f32 to vector<2x2x128xf32>
    %269 = arith.subf %252, %268 : vector<2x2x128xf32>
    %270 = arith.subf %269, %260 : vector<2x2x128xf32>
    %cst_70 = arith.constant 0.693147182 : f32
    %271 = vector.broadcast %cst_70 : f32 to vector<2x2x128xf32>
    %272 = arith.subf %254, %271 : vector<2x2x128xf32>
    %273 = arith.maximumf %252, %254 : vector<2x2x128xf32>
    %274 = arith.subf %252, %254 : vector<2x2x128xf32>
    %275 = math.absf %274 : vector<2x2x128xf32>
    %cst_71 = arith.constant 0.000000e+00 : f32
    %276 = vector.broadcast %cst_71 : f32 to vector<2x2x128xf32>
    %277 = arith.subf %276, %275 : vector<2x2x128xf32>
    %278 = math.exp %277 : vector<2x2x128xf32>
    %279 = math.log1p %278 : vector<2x2x128xf32>
    %280 = arith.addf %273, %279 : vector<2x2x128xf32>
    %281 = arith.mulf %265, %263 : vector<2x2x128xf32>
    %282 = arith.subf %270, %281 : vector<2x2x128xf32>
    %283 = arith.subf %272, %265 : vector<2x2x128xf32>
    %284 = arith.maximumf %282, %283 : vector<2x2x128xf32>
    %285 = arith.subf %282, %283 : vector<2x2x128xf32>
    %286 = math.absf %285 : vector<2x2x128xf32>
    %cst_72 = arith.constant 0.000000e+00 : f32
    %287 = vector.broadcast %cst_72 : f32 to vector<2x2x128xf32>
    %288 = arith.subf %287, %286 : vector<2x2x128xf32>
    %289 = math.exp %288 : vector<2x2x128xf32>
    %290 = math.log1p %289 : vector<2x2x128xf32>
    %291 = arith.addf %284, %290 : vector<2x2x128xf32>
    %292 = arith.subf %280, %291 : vector<2x2x128xf32>
    %293 = arith.mulf %267, %263 : vector<2x2x128xf32>
    %294 = arith.subf %270, %293 : vector<2x2x128xf32>
    %295 = arith.subf %272, %267 : vector<2x2x128xf32>
    %296 = arith.maximumf %294, %295 : vector<2x2x128xf32>
    %297 = arith.subf %294, %295 : vector<2x2x128xf32>
    %298 = math.absf %297 : vector<2x2x128xf32>
    %cst_73 = arith.constant 0.000000e+00 : f32
    %299 = vector.broadcast %cst_73 : f32 to vector<2x2x128xf32>
    %300 = arith.subf %299, %298 : vector<2x2x128xf32>
    %301 = math.exp %300 : vector<2x2x128xf32>
    %302 = math.log1p %301 : vector<2x2x128xf32>
    %303 = arith.addf %296, %302 : vector<2x2x128xf32>
    %304 = arith.subf %280, %303 : vector<2x2x128xf32>
    %305 = arith.cmpf oeq, %292, %292 : vector<2x2x128xf32>
    %306 = math.absf %292 : vector<2x2x128xf32>
    %cst_74 = arith.constant 0x7F800000 : f32
    %307 = vector.broadcast %cst_74 : f32 to vector<2x2x128xf32>
    %308 = arith.cmpf olt, %306, %307 : vector<2x2x128xf32>
    %309 = arith.andi %305, %308 : vector<2x2x128xi1>
    %310 = arith.andi %309, %26 : vector<2x2x128xi1>
    %311 = arith.cmpf oeq, %304, %304 : vector<2x2x128xf32>
    %312 = math.absf %304 : vector<2x2x128xf32>
    %cst_75 = arith.constant 0x7F800000 : f32
    %313 = vector.broadcast %cst_75 : f32 to vector<2x2x128xf32>
    %314 = arith.cmpf olt, %312, %313 : vector<2x2x128xf32>
    %315 = arith.andi %311, %314 : vector<2x2x128xi1>
    %316 = arith.andi %315, %26 : vector<2x2x128xi1>
    %cst_76 = arith.constant 0.000000e+00 : f32
    %317 = vector.broadcast %cst_76 : f32 to vector<2x2x128xf32>
    %318 = arith.select %310, %292, %317 : vector<2x2x128xi1>, vector<2x2x128xf32>
    %cst_77 = arith.constant 0.000000e+00 : f32
    %319 = vector.broadcast %cst_77 : f32 to vector<2x2x128xf32>
    %320 = arith.select %316, %304, %319 : vector<2x2x128xi1>, vector<2x2x128xf32>
    %321 = arith.addf %318, %320 : vector<2x2x128xf32>
    %322 = vector.shape_cast %321 : vector<2x2x128xf32> to vector<1x2x2x128xf32>
    %cst_78 = arith.constant dense<0.000000e+00> : vector<1xf32>
    %323 = vector.multi_reduction <add>, %322, %cst_78 [1, 2, 3] : vector<1x2x2x128xf32> to vector<1xf32>
    %324 = vector.shape_cast %323 : vector<1xf32> to vector<1x1x1x1xf32>
    %325 = vector.extract %324[0, 0, 0, 0] : f32 from vector<1x1x1x1xf32>
    %326 = arith.extui %310 : vector<2x2x128xi1> to vector<2x2x128xi32>
    %327 = arith.sitofp %326 : vector<2x2x128xi32> to vector<2x2x128xf32>
    %328 = arith.extui %316 : vector<2x2x128xi1> to vector<2x2x128xi32>
    %329 = arith.sitofp %328 : vector<2x2x128xi32> to vector<2x2x128xf32>
    %330 = arith.addf %327, %329 : vector<2x2x128xf32>
    %331 = vector.shape_cast %330 : vector<2x2x128xf32> to vector<1x2x2x128xf32>
    %cst_79 = arith.constant dense<0.000000e+00> : vector<1xf32>
    %332 = vector.multi_reduction <add>, %331, %cst_79 [1, 2, 3] : vector<1x2x2x128xf32> to vector<1xf32>
    %333 = vector.shape_cast %332 : vector<1xf32> to vector<1x1x1x1xf32>
    %334 = vector.extract %333[0, 0, 0, 0] : f32 from vector<1x1x1x1xf32>
    %c2_i32_80 = arith.constant 2 : i32
    %335 = vector.broadcast %c2_i32_80 : i32 to vector<1x128xi32>
    %336 = arith.cmpi eq, %27, %335 : vector<1x128xi32>
    %cst_81 = arith.constant 0.000000e+00 : f32
    %337 = vector.broadcast %325 : f32 to vector<1x128xf32>
    %338 = vector.broadcast %cst_81 : f32 to vector<1x128xf32>
    %339 = arith.select %336, %337, %338 : vector<1x128xi1>, vector<1x128xf32>
    %340 = arith.addf %244, %339 : vector<1x128xf32>
    %c5_i32 = arith.constant 5 : i32
    %341 = vector.broadcast %c5_i32 : i32 to vector<1x128xi32>
    %342 = arith.cmpi eq, %27, %341 : vector<1x128xi32>
    %cst_82 = arith.constant 0.000000e+00 : f32
    %343 = vector.broadcast %334 : f32 to vector<1x128xf32>
    %344 = vector.broadcast %cst_82 : f32 to vector<1x128xf32>
    %345 = arith.select %342, %343, %344 : vector<1x128xi1>, vector<1x128xf32>
    %346 = arith.addf %340, %345 : vector<1x128xf32>
    %347 = vector.shape_cast %346 : vector<1x128xf32> to vector<1x1x128xf32>
    %c0_83 = arith.constant 0 : index
    %c0_84 = arith.constant 0 : index
    %c0_85 = arith.constant 0 : index
    %348 = vector.load %arg9[%c0_83, %c0_84, %c0_85] : memref<1x1x128xf32, #tpu.memory_space<vmem>>, vector<1x1x128xf32>
    tpu.vector_store %arg9[%c0_83, %c0_84, %c0_85], %347 {strides = array<i32>} : memref<1x1x128xf32, #tpu.memory_space<vmem>>, vector<1x1x128xf32>,
    return
  }
  func.func @transform_0(%arg0: i32) -> (i32, i32, i32, i32) {
    %c0_i32 = arith.constant 0 : i32
    %c0_i32_0 = arith.constant 0 : i32
    %c0_i32_1 = arith.constant 0 : i32
    %c0_i32_2 = arith.constant 0 : i32
    return %c0_i32, %c0_i32_0, %arg0, %c0_i32_1 : i32, i32, i32, i32
  }
  func.func @transform_1(%arg0: i32) -> (i32, i32, i32, i32) {
    %c0_i32 = arith.constant 0 : i32
    %c0_i32_0 = arith.constant 0 : i32
    %c0_i32_1 = arith.constant 0 : i32
    %c0_i32_2 = arith.constant 0 : i32
    return %c0_i32, %c0_i32_0, %arg0, %c0_i32_1 : i32, i32, i32, i32
  }
  func.func @transform_2(%arg0: i32) -> (i32, i32, i32, i32) {
    %c0_i32 = arith.constant 0 : i32
    %c0_i32_0 = arith.constant 0 : i32
    %c0_i32_1 = arith.constant 0 : i32
    %c0_i32_2 = arith.constant 0 : i32
    return %c0_i32, %c0_i32_0, %arg0, %c0_i32_1 : i32, i32, i32, i32
  }
  func.func @transform_3(%arg0: i32) -> (i32, i32, i32, i32) {
    %c0_i32 = arith.constant 0 : i32
    %c0_i32_0 = arith.constant 0 : i32
    %c0_i32_1 = arith.constant 0 : i32
    %c0_i32_2 = arith.constant 0 : i32
    return %c0_i32, %c0_i32_0, %arg0, %c0_i32_1 : i32, i32, i32, i32
  }
  func.func @transform_4(%arg0: i32) -> (i32, i32, i32, i32) {
    %c0_i32 = arith.constant 0 : i32
    %c0_i32_0 = arith.constant 0 : i32
    %c0_i32_1 = arith.constant 0 : i32
    %c0_i32_2 = arith.constant 0 : i32
    return %c0_i32, %c0_i32_0, %arg0, %c0_i32_1 : i32, i32, i32, i32
  }
  func.func @transform_5(%arg0: i32) -> (i32, i32, i32, i32) {
    %c0_i32 = arith.constant 0 : i32
    %c0_i32_0 = arith.constant 0 : i32
    %c0_i32_1 = arith.constant 0 : i32
    %c0_i32_2 = arith.constant 0 : i32
    return %c0_i32, %c0_i32_0, %arg0, %c0_i32_1 : i32, i32, i32, i32
  }
  func.func @transform_6(%arg0: i32) -> (i32, i32, i32, i32) {
    %c0_i32 = arith.constant 0 : i32
    %c0_i32_0 = arith.constant 0 : i32
    %c0_i32_1 = arith.constant 0 : i32
    %c0_i32_2 = arith.constant 0 : i32
    return %c0_i32, %c0_i32_0, %arg0, %c0_i32_1 : i32, i32, i32, i32
  }
  func.func @transform_7(%arg0: i32) -> (i32, i32, i32) {
    %c0_i32 = arith.constant 0 : i32
    %c0_i32_0 = arith.constant 0 : i32
    %c0_i32_1 = arith.constant 0 : i32
    return %c0_i32, %arg0, %c0_i32_0 : i32, i32, i32
  }
  func.func @transform_8(%arg0: i32) -> (i32, i32, i32) {
    %c0_i32 = arith.constant 0 : i32
    %c0_i32_0 = arith.constant 0 : i32
    %c0_i32_1 = arith.constant 0 : i32
    return %arg0, %c0_i32, %c0_i32_0 : i32, i32, i32
  }
}

</mosaic_0001>

<bundles_post_ra>
// kernel: tpu_custom_call.1
= control target key start
LH: loop header
LB: loop body
LE: loop exit
PB: predicated region body
PF: predicated region fallthrough
CT: control target
= control target key end

     0   :  { %13 = vsyncpa [#allocation3], 0  ;;  %s1877_s0 = inlined_call_operand.hbm [shape: f32[2,2,2,128], index: 0, kind: input, shape index: {}]   ;;  %s1878_s1 = inlined_call_operand.hbm [shape: f32[2,2,2,128], index: 1, kind: input, shape index: {}]   ;;  %s1879_s2 = inlined_call_operand.hbm [shape: f32[2,2,2,128], index: 2, kind: input, shape index: {}]   ;;  %s1880_s3 = inlined_call_operand.hbm [shape: f32[2,4,2,128], index: 3, kind: input, shape index: {}]   ;;  %s1881_s4 = inlined_call_operand.hbm [shape: f32[2,4,2,128], index: 4, kind: input, shape index: {}]   ;;  %s1882_s5 = inlined_call_operand.hbm [shape: f32[2,4,2,128], index: 5, kind: input, shape index: {}]   ;;  %s1883_s6 = inlined_call_operand.vmem [shape: f32[2,2,2,128], index: 6, kind: input, shape index: {}]   ;;  %s1884_s7 = inlined_call_operand.vmem [shape: f32[2,2,128], index: 7, kind: input, shape index: {}]   ;;  %s1885_s8 = inlined_call_operand.hbm [shape: f32[1,1,128], index: 8, kind: output, shape index: {}]  }
   0x1   :  { %14 = vsyncpa [#allocation6], 0 }
   0x2   :  { %15 = vsyncpa [#allocation9], 0 }
   0x3   :  { %16 = vsyncpa [#allocation12], 0 }
   0x4   :  { %17 = vsyncpa [#allocation4], 0  ;;  %s1152_s27 = smov [#allocation5]   ;;  %s1153_s29 = smov [#allocation2]  }
   0x5   :  { %s35_s28 = sshll.u32 %s1152_s27, 4  ;;  %s23_s30 = sshll.u32 %s1153_s29, 4  ;;  %s36_s28 = int_to_ptr.vmem [resolvable:$true] %s35_s28  ;;  %s24_s30 = int_to_ptr.vmem [resolvable:$true] %s23_s30 }
   0x6   :  { %s1070_s9 = scalar_lea.vmem %s36_s28, 128  ;;  %p1075_p1 = scmp.lt.s32.totalorder %s36_s28, %s36_s28 }
   0x7   :  { %p1071_p0 = scmp.ne.s32.totalorder %s36_s28, %s1070_s9  ;;  %p1076_p2 = scmp.lt.s32.totalorder %s1070_s9, %s1070_s9 }
   0x9   :  { %p1077_p3 = por %p1076_p2, %p1075_p1 }
   0xb   :  { %p1078_p4 = pnand %p1077_p3, %p1071_p0 }
   0xd   :  { %1081 = shalt.err (!%p1078_p4)
}
   0xe   :  { %s1154_s10 = smov 32   ;;  %s1155_s11 = smov 2  }
   0xf   :  { %41 = dma.hbm_to_vmem [thread:$0]  %s1878_s1, 128, %s36_s28, [#allocation6], %s1154_s10, %s1154_s10, %s1155_s11  }
  0x10   :  { %s1090_s14 = scalar_lea.vmem %s24_s30, 128  ;;  %p1095_p6 = scmp.lt.s32.totalorder %s24_s30, %s24_s30 }
  0x11   :  { %p1091_p5 = scmp.ne.s32.totalorder %s24_s30, %s1090_s14  ;;  %p1096_p7 = scmp.lt.s32.totalorder %s1090_s14, %s1090_s14 }
  0x13   :  { %p1097_p8 = por %p1096_p7, %p1095_p6 }
  0x15   :  { %p1098_p9 = pnand %p1097_p8, %p1091_p5 }
  0x17   :  { %1101 = shalt.err (!%p1098_p9)
}
  0x18   :  { %29 = dma.hbm_to_vmem [thread:$0]  %s1877_s0, 128, %s24_s30, [#allocation3], %s1154_s10, %s1154_s10, %s1155_s11  }
  0x19   :  { %s1156_s17 = smov [#allocation7]  }
  0x1a   :  { %s47_s18 = sshll.u32 %s1156_s17, 4  ;;  %s48_s18 = int_to_ptr.vmem [resolvable:$true] %s47_s18 }
  0x1b   :  { %s1110_s19 = scalar_lea.vmem %s48_s18, 128  ;;  %p1115_p11 = scmp.lt.s32.totalorder %s48_s18, %s48_s18 }
  0x1c   :  { %p1111_p10 = scmp.ne.s32.totalorder %s48_s18, %s1110_s19  ;;  %p1116_p12 = scmp.lt.s32.totalorder %s1110_s19, %s1110_s19 }
  0x1e   :  { %p1117_p13 = por %p1116_p12, %p1115_p11 }
  0x20   :  { %p1118_p0 = pnand %p1117_p13, %p1111_p10 }
  0x22   :  { %1121 = shalt.err (!%p1118_p0)
}
  0x23   :  { %53 = dma.hbm_to_vmem [thread:$0]  %s1879_s2, 128, %s48_s18, [#allocation6], %s1154_s10, %s1154_s10, %s1155_s11  }
  0x24   :  { %s63_s21 = sld [smem:[#allocation0]]   ;;  %s1157_s22 = smov [#allocation8]  }
  0x25   :  { %s71_s23 = sshll.u32 %s1157_s22, 4  ;;  %s1158_s24 = smov 128   ;;  %s72_s23 = int_to_ptr.vmem [resolvable:$true] %s71_s23 }
  0x26   :  { %78 = sst [smem:[#allocation15]] %s1158_s24  ;;  %s1159_s0 = smov 96  }
  0x27   :  { %80 = sst [smem:[#allocation15 + $0x1]] %s1159_s0  ;;  %s1160_s25 = smov 3  }
  0x28   :  { %82 = sst [smem:[#allocation15 + $0x2]] %s1160_s25  ;;  %s1161_s27 = smov 32  }
  0x29   :  { %84 = sst [smem:[#allocation15 + $0x3]] %s1161_s27  ;;  %s1162_s29 = smov 2  }
  0x2a   :  { %s901_s26 = sshll.u32 %s63_s21, 26  ;;  %86 = sst [smem:[#allocation15 + $0x4]] %s1161_s27 }
  0x2b   :  { %s902_s28 = sadd.s32 134217728, %s901_s26  ;;  %88 = sst [smem:[#allocation15 + $0x5]] %s1162_s29 }
  0x2c   :  { %s1163_s30 = smov [#allocation9]   ;;  %s1164_s9 = smov 131072  }
  0x2d   :  { %90 = dma.general %s1880_s3, 192, %s72_s23, %s1163_s30, %s1164_s9, [#allocation15], %s902_s28, 0  }
  0x2e   :  { %s100_s11 = sld [smem:[#allocation0]]   ;;  %s1165_s12 = smov [#allocation10]  }
  0x2f   :  { %s108_s13 = sshll.u32 %s1165_s12, 4  ;;  %s1166_s14 = smov 128   ;;  %s109_s13 = int_to_ptr.vmem [resolvable:$true] %s108_s13 }
  0x30   :  { %115 = sst [smem:[#allocation17]] %s1166_s14  ;;  %s1167_s15 = smov 96  }
  0x31   :  { %117 = sst [smem:[#allocation17 + $0x1]] %s1167_s15  ;;  %s1168_s16 = smov 3  }
  0x32   :  { %119 = sst [smem:[#allocation17 + $0x2]] %s1168_s16  ;;  %s1169_s18 = smov 32  }
  0x33   :  { %121 = sst [smem:[#allocation17 + $0x3]] %s1169_s18  ;;  %s1170_s1 = smov 2  }
  0x34   :  { %s903_s17 = sshll.u32 %s100_s11, 26  ;;  %123 = sst [smem:[#allocation17 + $0x4]] %s1169_s18 }
  0x35   :  { %s904_s19 = sadd.s32 134217728, %s903_s17  ;;  %125 = sst [smem:[#allocation17 + $0x5]] %s1170_s1 }
  0x36   :  { %s1171_s20 = smov [#allocation9]   ;;  %s1172_s21 = smov 131072  }
  0x37   :  { %127 = dma.general %s1881_s4, 192, %s109_s13, %s1171_s20, %s1172_s21, [#allocation17], %s904_s19, 0  }
  0x38   :  { %s137_s23 = sld [smem:[#allocation0]]   ;;  %s1173_s24 = smov [#allocation11]  }
  0x39   :  { %s145_s0 = sshll.u32 %s1173_s24, 4  ;;  %s1174_s25 = smov 128   ;;  %s146_s0 = int_to_ptr.vmem [resolvable:$true] %s145_s0 }
  0x3a   :  { %152 = sst [smem:[#allocation19]] %s1174_s25  ;;  %s1175_s26 = smov 96  }
  0x3b   :  { %154 = sst [smem:[#allocation19 + $0x1]] %s1175_s26  ;;  %s1176_s27 = smov 3  }
  0x3c   :  { %156 = sst [smem:[#allocation19 + $0x2]] %s1176_s27  ;;  %s1177_s29 = smov 32  }
  0x3d   :  { %158 = sst [smem:[#allocation19 + $0x3]] %s1177_s29  ;;  %s1178_s9 = smov 2  }
  0x3e   :  { %s905_s28 = sshll.u32 %s137_s23, 26  ;;  %160 = sst [smem:[#allocation19 + $0x4]] %s1177_s29 }
  0x3f   :  { %s906_s30 = sadd.s32 134217728, %s905_s28  ;;  %162 = sst [smem:[#allocation19 + $0x5]] %s1178_s9 }
  0x40   :  { %s1179_s2 = smov [#allocation12]   ;;  %s1180_s10 = smov 131072  }
  0x41   :  { %164 = dma.general %s1882_s5, 192, %s146_s0, %s1179_s2, %s1180_s10, [#allocation19], %s906_s30, 0  }
  0x42   :  { %1142 = dma.done.wait [#allocation3], 128  }
  0x43   :  { %1143 = vsyncadd [#allocation3], 4294967168 }
  0x44   :  { %1144 = dma.done.wait [#allocation6], 256  }
  0x45   :  { %1145 = vsyncadd [#allocation6], 4294967040 }
  0x46   :  { %1146 = dma.done.wait [#allocation9], 384  }
  0x47   :  { %1147 = vsyncadd [#allocation9], 4294966912 }
  0x48   :  { %1148 = dma.done.wait [#allocation12], 192  }
  0x49   :  { %1149 = vsyncadd [#allocation12], 4294967104  ;;  %v193_v0 = vlaneseq  ;;  %v1251_v4 = vld [vmem:[%s1883_s6] sm:$0x3]  ;;  %v1256_v5 = vld [vmem:[%s1883_s6 + $0x2] sm:$0x3] }
  0x4a   :  { %v1261_v6 = vld [vmem:[%s1883_s6 + $0x4] sm:$0x3]  ;;  %v1266_v7 = vld [vmem:[%s1883_s6 + $0x6] sm:$0x3]  ;;  %v191_v8 = vld [vmem:[%s1884_s7] sm:$0x3]  ;;  %v203_v11 = vmul.f32 %v1251_v4, %v1251_v4  ;;  %v205_v13 = vmul.f32 %v1256_v5, %v1256_v5 }
  0x4b   :  { %v194_v1 = vshrl.u32 %v193_v0, 7  ;;  %v1246_v2 = vand.u32 127, %v193_v0  ;;  %v192_v9 = vld [vmem:[%s1884_s7 + $0x2] sm:$0x3]  ;;  %v204_v12 = vmul.f32 %v1261_v6, %v1261_v6  ;;  %v206_v14 = vmul.f32 %v1266_v7, %v1266_v7  ;;  %v240_v15 = vld [vmem:[#allocation2] sm:$0x3] }
  0x4c   :  { %vm211_vm0 = vcmp.gt.f32.partialorder %v191_v8, 0.5  ;;  %v207_v16 = vadd.f32 %v205_v13, %v203_v11  ;;  %v241_v17 = vld [vmem:[#allocation2 + $0x2] sm:$0x3]  ;;  %v242_v18 = vld [vmem:[#allocation2 + $0x4] sm:$0x3]  ;;  %vm212_vm1 = vcmp.gt.f32.partialorder %v192_v9, 0.5  ;;  %v260_v22 = vsub.f32 %v1251_v4, %v240_v15 }
  0x4d   :  { %1896 = vst [vmem:[#allocation25_spill] sm:$0xff] %v1246_v2  ;;  %v200_v3 = vmul.u32 128, %v194_v1  ;;  %v243_v19 = vld [vmem:[#allocation2 + $0x6] sm:$0x3]  ;;  %v208_v20 = vadd.f32 %v206_v14, %v204_v12  ;;  %v246_v21 = vld [vmem:[#allocation8 + $0x4] sm:$0x3]  ;;  %v261_v23 = vsub.f32 %v1261_v6, %v242_v18  ;;  %v264_v26 = vsub.f32 %v1256_v5, %v241_v17 }
  0x4e   :  { %vm209_vm3 = vcmp.lt.f32.partialorder %v207_v16, 256.0  ;;  %v1285_v24 = vld [vmem:[#allocation8] sm:$0x3]  ;;  %v250_v25 = vmax.f32 %v246_v21, 0.0  ;;  %vm223_vm6 = vcmask 1041408   ;;  %v265_v29 = vsub.f32 %v1266_v7, %v243_v19  ;;  %s1182_s25 = smov [#allocation13]  }
  0x4f   :  { %v201_v10 = vadd.s32 %v200_v3, %v1246_v2  ;;  %vm210_vm4 = vcmp.lt.f32.partialorder %v208_v20, 256.0  ;;  %vm213_vm5 = vmand %vm209_vm3, %vm211_vm0  ;;  %v1289_v27 = vld [vmem:[#allocation8 + $0x2] sm:$0x3]  ;;  %v249_v28 = vld [vmem:[#allocation8 + $0xa] sm:$0x3]  ;;  %v1886_v40 = vmov 0.0  }
  0x50   :  { %vm214_vm7 = vmand %vm210_vm4, %vm212_vm1  ;;  %v1293_v30 = vld [vmem:[#allocation8 + $0x6] sm:$0x3]  ;;  %v1295_v31 = vld [vmem:[#allocation8 + $0x8] sm:$0x3]  ;;  %v251_v32 = vmax.f32 %v249_v28, 0.0  ;;  %v252_v33 = vmin.f32 %v250_v25, 10.0  ;;  %v276_v37 = vsub.f32 %v1285_v24, %v1289_v27 }
  0x51   :  { %vm202_vm2 = vcmp.lt.s32.totalorder %v201_v10, 256  ;;  %v1302_v35 = vand.u32 2147483647, %v260_v22  ;;  %v1304_v36 = vand.u32 2147483647, %v261_v23  ;;  %v277_v38 = vsub.f32 %v1293_v30, %v1295_v31  ;;  %s889_s26 = sshll.u32 %s1182_s25, 4  ;;  %s890_s26 = int_to_ptr.vmem [resolvable:$true] %s889_s26 }
  0x52   :  { %vm1298_vm8 = vmand %vm213_vm5, %vm202_vm2  ;;  %v253_v42 = vmin.f32 %v251_v32, 10.0  ;;  %v254_v43 = vsub.f32 0.0, %v252_v33  ;;  %v1318_v44 = vand.u32 2147483647, %v264_v26  ;;  %v1324_v47 = vand.u32 2147483647, %v265_v29  ;;  %p1127_p2 = scmp.lt.s32.totalorder %s890_s26, %s890_s26 }
  0x53   :  { %vm1311_vm9 = vmand %vm214_vm7, %vm202_vm2  ;;  %v907_v41 = vsel %vm1298_vm8, 1.0, %v1886_v40  ;;  %v454_v48 = vld [vmem:[#allocation5] sm:$0x3]  ;;  %v455_v52 = vld [vmem:[#allocation5 + $0x2] sm:$0x3]  ;;  %s1122_s27 = scalar_lea.vmem %s890_s26, 16 }
  0x54   :  { %v908_v45 = vsel %vm1311_vm9, 1.0, %v1886_v40  ;;  %v224_v46 = vsel %vm223_vm6, %v907_v41, 0.0  ;;  %v255_v50 = vsub.f32 0.0, %v253_v42  ;;  %v256_v51 = vmul.f32 1.442695, %v254_v43  ;;  %p1123_p1 = scmp.ne.s32.totalorder %s890_s26, %s1122_s27  ;;  %s1126_s28 = scalar_lea.vmem %s890_s26, 32 }
  0x55   :  { %v225_v49 = vsel %vm223_vm6, %v908_v45, 0.0  ;;  %v278_v54 = vand.u32 2147483647, %v276_v37  ;;  %v279_v55 = vand.u32 2147483647, %v277_v38  ;;  %v474_v0 = vsub.f32 %v1251_v4, %v454_v48  ;;  %p1128_p3 = scmp.lt.s32.totalorder %s1126_s28, %s1122_s27 }
  0x56   :  { %v226_v53 = vadd.f32 %v225_v49, %v224_v46  ;;  %v456_v56 = vld [vmem:[#allocation5 + $0x4] sm:$0x3]  ;;  %978 = vpow2.f32 %v256_v51  ;;  %v258_v57 = vmul.f32 1.442695, %v255_v50  ;;  %v909_v58 = vadd.f32 -0.6931472, %v1285_v24 }
  0x57   :  { %v457_v59 = vld [vmem:[#allocation5 + $0x6] sm:$0x3]  ;;  %v910_v60 = vadd.f32 -0.6931472, %v1293_v30  ;;  %v280_v61 = vsub.f32 0.0, %v278_v54  ;;  %v281_v62 = vsub.f32 0.0, %v279_v55  ;;  %v475_v3 = vsub.f32 %v1261_v6, %v456_v56  ;;  %p1129_p4 = por %p1128_p3, %p1127_p2 }
  0x58   :  { %227 = vadd.xlane.f32.xlu0 %v226_v53  ;;  %v460_v63 = vld [vmem:[#allocation10 + $0x4] sm:$0x3]  ;;  %980 = vpow2.f32 %v258_v57  ;;  %v463_v1 = vld [vmem:[#allocation10 + $0xa] sm:$0x3]  ;;  %v478_v8 = vsub.f32 %v1256_v5, %v455_v52  ;;  %v479_v9 = vsub.f32 %v1266_v7, %v457_v59  ;;  %v911_v14 = vadd.f32 -0.6931472, %v1289_v27 }
  0x59   :  { %v282_v10 = vmul.f32 1.442695, %v280_v61  ;;  %v284_v11 = vmul.f32 1.442695, %v281_v62  ;;  %v464_v12 = vmax.f32 %v460_v63, 0.0  ;;  %v465_v13 = vmax.f32 %v463_v1, 0.0  ;;  %p1130_p5 = pnand %p1129_p4, %p1123_p1 }
  0x5a   :  { %v912_v15 = vadd.f32 -0.6931472, %v1295_v31  ;;  %v1337_v17 = vld [vmem:[#allocation10] sm:$0x3]  ;;  %v1341_v19 = vld [vmem:[#allocation10 + $0x2] sm:$0x3]  ;;  %v1345_v23 = vsub.f32 %v909_v58, %v252_v33  ;;  %v271_v46 = vsub.f32 %v910_v60, %v253_v42  ;;  %v1365_v51 = vsub.f32 %v911_v14, %v1302_v35 }
  0x5b   :  { %982 = vpow2.f32 %v282_v10  ;;  %v1343_v20 = vld [vmem:[#allocation10 + $0x6] sm:$0x3]  ;;  %v466_v21 = vmin.f32 %v464_v12, 10.0  ;;  %v467_v22 = vmin.f32 %v465_v13, 10.0  ;;  %v1347_v25 = vld [vmem:[#allocation10 + $0x8] sm:$0x3]  ;;  %v490_v33 = vsub.f32 %v1337_v17, %v1341_v19 }
  0x5c   :  { %984 = vpow2.f32 %v284_v11  ;;  %v1349_v26 = vand.u32 2147483647, %v474_v0  ;;  %v1351_v28 = vand.u32 2147483647, %v475_v3  ;;  %v1353_v37 = vand.u32 2147483647, %v478_v8 }
  0x5d   :  { %v468_v29 = vsub.f32 0.0, %v466_v21  ;;  %v469_v32 = vsub.f32 0.0, %v467_v22  ;;  %v1355_v38 = vand.u32 2147483647, %v479_v9  ;;  %v917_v41 = vadd.f32 -0.6931472, %v1337_v17 }
  0x5e   :  { %v918_v43 = vadd.f32 -0.6931472, %v1343_v20  ;;  %v491_v45 = vsub.f32 %v1343_v20, %v1347_v25  ;;  %v919_v50 = vadd.f32 -0.6931472, %v1341_v19  ;;  %v1368_v52 = vsub.f32 %v912_v15, %v1304_v36  ;;  %v674_v55 = vld [vmem:[#allocation11 + $0x4] sm:$0x3] }
  0x5f   :  { %v470_v48 = vmul.f32 1.442695, %v468_v29  ;;  %v472_v49 = vmul.f32 1.442695, %v469_v32  ;;  %v920_v53 = vadd.f32 -0.6931472, %v1347_v25  ;;  %v1372_v56 = vsub.f32 %v911_v14, %v1318_v44 }
  0x60   :  { %v492_v54 = vand.u32 2147483647, %v490_v33  ;;  %v1375_v57 = vsub.f32 %v912_v15, %v1324_v47  ;;  %v668_v58 = vld [vmem:[#allocation7] sm:$0x3]  ;;  %v669_v59 = vld [vmem:[#allocation7 + $0x2] sm:$0x3]  ;;  %v1381_v3 = vsub.f32 %v917_v41, %v466_v21  ;;  %v1383_v8 = vsub.f32 %v918_v43, %v467_v22 }
  0x61   :  { %986 = vpow2.f32 %v470_v48  ;;  %v677_v60 = vld [vmem:[#allocation11 + $0xa] sm:$0x3]  ;;  %v493_v62 = vand.u32 2147483647, %v491_v45  ;;  %v670_v0 = vld [vmem:[#allocation7 + $0x4] sm:$0x3]  ;;  %v1386_v9 = vsub.f32 %v919_v50, %v1349_v26  ;;  %v1390_v13 = vsub.f32 %v920_v53, %v1351_v28 }
  0x62   :  { %988 = vpow2.f32 %v472_v49  ;;  %v494_v63 = vsub.f32 0.0, %v492_v54  ;;  %v678_v10 = vmax.f32 %v674_v55, 0.0  ;;  %v671_v14 = vld [vmem:[#allocation7 + $0x6] sm:$0x3]  ;;  %v679_v15 = vmax.f32 %v677_v60, 0.0 }
  0x63   :  { %v979_v1 = vpop.eup %978  ;;  %v688_v21 = vsub.f32 %v1251_v4, %v668_v58  ;;  %v689_v22 = vsub.f32 %v1261_v6, %v670_v0  ;;  %v692_v41 = vsub.f32 %v1256_v5, %v669_v59  ;;  %v495_v45 = vsub.f32 0.0, %v493_v62 }
  0x64   :  { %v306_v11 = vmul.f32 %v979_v1, %v1302_v35  ;;  %v496_v12 = vmul.f32 1.442695, %v494_v63  ;;  %v346_v32 = vmul.f32 %v979_v1, %v1318_v44  ;;  %v1402_v48 = vsub.f32 %v919_v50, %v1353_v37 }
  0x65   :  { %v981_v29 = vpop.eup %980  ;;  %v1404_v49 = vmin.f32 %v678_v10, 10.0  ;;  %v693_v4 = vsub.f32 %v1266_v7, %v671_v14  ;;  %v1418_v54 = vmin.f32 %v679_v15, 10.0  ;;  %v1426_v58 = vand.u32 2147483647, %v688_v21 }
  0x66   :  { %v307_v43 = vmul.f32 %v981_v29, %v1304_v36  ;;  %v1398_v33 = vsub.f32 %v1345_v23, %v306_v11  ;;  %v347_v35 = vmul.f32 %v981_v29, %v1324_v47  ;;  %990 = vpow2.f32 %v496_v12  ;;  %v1416_v47 = vld [vmem:[#allocation11] sm:$0x3] }
  0x67   :  { %v1414_v36 = vsub.f32 %v920_v53, %v1355_v38  ;;  %1901 = vst [vmem:[#allocation26_spill] sm:$0xff] %v1416_v47  ;;  %v1424_v7 = vsub.f32 %v1345_v23, %v346_v32  ;;  %v1428_v59 = vand.u32 2147483647, %v689_v22  ;;  %v498_v53 = vmul.f32 1.442695, %v495_v45 }
  0x68   :  { %v1407_v44 = vpop.eup %982  ;;  %v1409_v6 = vsub.f32 %v271_v46, %v307_v43  ;;  %v314_v5 = vsub.f32 %v1398_v33, %v1365_v51  ;;  %v1431_v62 = vsub.f32 %v271_v46, %v347_v35  ;;  %v1433_v63 = vand.u32 2147483647, %v692_v41 }
  0x69   :  { %v1420_v50 = vpop.eup %984  ;;  %v286_v55 = vadd.f32 1.0, %v1407_v44  ;;  %v682_v1 = vsub.f32 0.0, %v1404_v49  ;;  %v1438_v10 = vand.u32 2147483647, %v693_v4  ;;  %v683_v11 = vsub.f32 0.0, %v1418_v54 }
  0x6a   :  { %v295_v60 = vadd.f32 1.0, %v1420_v50  ;;  %v315_v0 = vsub.f32 %v1409_v6, %v1368_v52  ;;  %v316_v23 = vand.u32 2147483647, %v314_v5  ;;  %v1442_v12 = vadd.f32 -0.6931472, %v1416_v47 }
  0x6b   :  { %992 = vlog2.f32 %v286_v55  ;;  %1902 = vst [vmem:[#allocation27_spill] sm:$0xff] %v1438_v10  ;;  %v289_v46 = vmul.f32 -0.5, %v1407_v44  ;;  %v354_v29 = vsub.f32 %v1424_v7, %v1372_v56  ;;  %v292_v21 = vand.u32 2147483647, %v1407_v44 }
  0x6c   :  { %994 = vlog2.f32 %v295_v60  ;;  %v317_v15 = vand.u32 2147483647, %v315_v0  ;;  %v318_v22 = vsub.f32 0.0, %v316_v23  ;;  %v355_v41 = vsub.f32 %v1431_v62, %v1375_v57 }
  0x6d   :  { %996 = vpow2.f32 %v498_v53  ;;  %v356_v45 = vand.u32 2147483647, %v354_v29  ;;  %vm1478_vm10 = vcmp.lt.f32.partialorder %v292_v21, 0.0004427343 }
  0x6e   :  { %v987_v32 = vpop.eup %986  ;;  %v319_v35 = vsub.f32 0.0, %v317_v15  ;;  %v320_v55 = vmul.f32 1.442695, %v318_v22  ;;  %v357_v60 = vand.u32 2147483647, %v355_v41  ;;  %v298_v15 = vmul.f32 -0.5, %v1420_v50 }
  0x6f   :  { %v989_v43 = vpop.eup %988  ;;  %v520_v4 = vmul.f32 %v987_v32, %v1349_v26  ;;  %v560_v5 = vmul.f32 %v987_v32, %v1353_v37  ;;  %v358_v61 = vsub.f32 0.0, %v356_v45  ;;  %v301_v22 = vand.u32 2147483647, %v1420_v50 }
  0x70   :  { %v521_v0 = vmul.f32 %v989_v43, %v1351_v28  ;;  %v561_v40 = vmul.f32 %v989_v43, %v1355_v38  ;;  %v322_v14 = vmul.f32 1.442695, %v319_v35  ;;  %998 = vpow2.f32 %v320_v55 }
  0x71   :  { %v1459_v53 = vsub.f32 %v1381_v3, %v520_v4  ;;  %v359_v26 = vsub.f32 0.0, %v357_v60  ;;  %v360_v29 = vmul.f32 1.442695, %v358_v61  ;;  %v1468_v38 = vsub.f32 %v1381_v3, %v560_v5 }
  0x72   :  { %v1463_v37 = vsub.f32 %v1383_v8, %v521_v0  ;;  %1000 = vpow2.f32 %v322_v14  ;;  %v1474_v35 = vsub.f32 %v1383_v8, %v561_v40  ;;  %v290_v45 = vadd.f32 1.0, %v289_v46 }
  0x73   :  { %v528_v28 = vsub.f32 %v1459_v53, %v1386_v9  ;;  %v991_v32 = vpop.eup %990  ;;  %v362_v41 = vmul.f32 1.442695, %v359_v26  ;;  %1002 = vpow2.f32 %v360_v29  ;;  %v299_v4 = vadd.f32 1.0, %v298_v15 }
  0x74   :  { %v529_v43 = vsub.f32 %v1463_v37, %v1390_v13  ;;  %v500_v14 = vadd.f32 1.0, %v991_v32  ;;  %v503_v60 = vmul.f32 -0.5, %v991_v32  ;;  %v568_v40 = vsub.f32 %v1468_v38, %v1402_v48 }
  0x75   :  { %1004 = vpow2.f32 %v362_v41  ;;  %v530_v3 = vand.u32 2147483647, %v528_v28  ;;  %v569_v26 = vsub.f32 %v1474_v35, %v1414_v36  ;;  %v684_v29 = vmul.f32 1.442695, %v682_v1 }
  0x76   :  { %v531_v5 = vand.u32 2147483647, %v529_v43  ;;  %1006 = vlog2.f32 %v500_v14  ;;  %v291_v28 = vmul.f32 %v1407_v44, %v290_v45  ;;  %vm1487_vm11 = vcmp.lt.f32.partialorder %v301_v22, 0.0004427343 }
  0x77   :  { %v532_v46 = vsub.f32 0.0, %v530_v3  ;;  %v570_v41 = vand.u32 2147483647, %v568_v40  ;;  %v686_v43 = vmul.f32 1.442695, %v683_v11  ;;  %v300_v23 = vmul.f32 %v1420_v50, %v299_v4 }
  0x78   :  { %v993_v8 = vpop.eup %992  ;;  %v533_v0 = vsub.f32 0.0, %v531_v5  ;;  %v506_v61 = vand.u32 2147483647, %v991_v32  ;;  %v571_v18 = vand.u32 2147483647, %v569_v26  ;;  %1008 = vpow2.f32 %v684_v29 }
  0x79   :  { %v995_v15 = vpop.eup %994  ;;  %v288_v14 = vmul.f32 0.6931472, %v993_v8  ;;  %v534_v42 = vmul.f32 1.442695, %v532_v46  ;;  %v572_v16 = vsub.f32 0.0, %v570_v41  ;;  %v504_v2 = vadd.f32 1.0, %v503_v60 }
  0x7a   :  { %v997_v3 = vpop.eup %996  ;;  %v536_v5 = vmul.f32 1.442695, %v533_v0  ;;  %v297_v1 = vmul.f32 0.6931472, %v995_v15  ;;  %1010 = vpow2.f32 %v686_v43  ;;  %v573_v46 = vsub.f32 0.0, %v571_v18 }
  0x7b   :  { %v509_v10 = vadd.f32 1.0, %v997_v3  ;;  %1012 = vpow2.f32 %v534_v42  ;;  %v512_v22 = vmul.f32 -0.5, %v997_v3  ;;  %v574_v4 = vmul.f32 1.442695, %v572_v16  ;;  %v1512_v16 = vld [vmem:[#allocation11 + $0x6] sm:$0x3] }
  0x7c   :  { %v294_v60 = vsel %vm1478_vm10, %v291_v28, %v288_v14  ;;  %v303_v26 = vsel %vm1487_vm11, %v300_v23, %v297_v1  ;;  %vm1508_vm12 = vcmp.lt.f32.partialorder %v506_v61, 0.0004427343  ;;  %1909 = vst [vmem:[#allocation28_spill] sm:$0xff] %v1512_v16  ;;  %v1910_v18 = vmax.f32 %v1285_v24, %v1289_v27 }
  0x7d   :  { %1014 = vlog2.f32 %v509_v10  ;;  %v999_v40 = vpop.eup %998  ;;  %v1506_v10 = vmul.f32 %v991_v32, %v504_v2  ;;  %v513_v23 = vadd.f32 1.0, %v512_v22  ;;  %v515_v2 = vand.u32 2147483647, %v997_v3 }
  0x7e   :  { %1016 = vpow2.f32 %v536_v5  ;;  %v324_v42 = vadd.f32 1.0, %v999_v40  ;;  %v327_v55 = vmul.f32 -0.5, %v999_v40  ;;  %v1517_v43 = vadd.f32 %v294_v60, %v1910_v18 }
  0x7f   :  { %v1001_v0 = vpop.eup %1000  ;;  %1018 = vpow2.f32 %v574_v4  ;;  %v576_v21 = vmul.f32 1.442695, %v573_v46  ;;  %v926_v14 = vadd.f32 -0.6931472, %v1512_v16  ;;  %v330_v1 = vand.u32 2147483647, %v999_v40 }
  0x80   :  { %v333_v15 = vadd.f32 1.0, %v1001_v0  ;;  %v336_v28 = vmul.f32 -0.5, %v1001_v0  ;;  %v1003_v41 = vpop.eup %1002  ;;  %1020 = vlog2.f32 %v324_v42  ;;  %v339_v8 = vand.u32 2147483647, %v1001_v0  ;;  %v1525_v46 = vld [vmem:[#allocation11 + $0x2] sm:$0x3] }
  0x81   :  { %v364_v61 = vadd.f32 1.0, %v1003_v41  ;;  %v367_v45 = vmul.f32 -0.5, %v1003_v41  ;;  %v328_v50 = vadd.f32 1.0, %v327_v55  ;;  %v1911_v27 = vmax.f32 %v1293_v30, %v1295_v31  ;;  %1912 = vst [vmem:[#allocation29_spill] sm:$0xff] %v1525_v46 }
  0x82   :  { %v1005_v32 = vpop.eup %1004  ;;  %1022 = vlog2.f32 %v333_v15  ;;  %v337_v11 = vadd.f32 1.0, %v336_v28  ;;  %v370_v60 = vand.u32 2147483647, %v1003_v41  ;;  %vm1527_vm13 = vcmp.lt.f32.partialorder %v515_v2, 0.0004427343 }
  0x83   :  { %v1007_v5 = vpop.eup %1006  ;;  %v373_v4 = vadd.f32 1.0, %v1005_v32  ;;  %1024 = vlog2.f32 %v364_v61  ;;  %v376_v24 = vmul.f32 -0.5, %v1005_v32  ;;  %v1523_v22 = vadd.f32 %v303_v26, %v1911_v27 }
  0x84   :  { %v502_v42 = vmul.f32 0.6931472, %v1007_v5  ;;  %v368_v15 = vadd.f32 1.0, %v367_v45  ;;  %v379_v18 = vand.u32 2147483647, %v1005_v32  ;;  %v514_v30 = vmul.f32 %v997_v3, %v513_v23 }
  0x85   :  { %1026 = vlog2.f32 %v373_v4  ;;  %v1531_v55 = vpop.eup %1008  ;;  %vm1533_vm14 = vcmp.lt.f32.partialorder %v330_v1, 0.0004427343  ;;  %v1539_v31 = vsub.f32 %v1442_v12, %v1404_v49  ;;  %v1542_v26 = vsub.f32 %v926_v14, %v1418_v54  ;;  %v1550_v1 = vld [vmem:[#allocation11 + $0x8] sm:$0x3] }
  0x86   :  { %1028 = vpow2.f32 %v576_v21  ;;  %v329_v2 = vmul.f32 %v999_v40, %v328_v50  ;;  %v338_v61 = vmul.f32 %v1001_v0, %v337_v11  ;;  %vm1546_vm15 = vcmp.lt.f32.partialorder %v339_v8, 0.0004427343  ;;  %1919 = vst [vmem:[#allocation30_spill] sm:$0xff] %v1550_v1 }
  0x87   :  { %v1544_v45 = vpop.eup %1010  ;;  %v377_v5 = vadd.f32 1.0, %v376_v24  ;;  %vm1552_vm0 = vcmp.lt.f32.partialorder %v370_v60, 0.0004427343  ;;  %v508_v49 = vsel %vm1508_vm12, %v1506_v10, %v502_v42  ;;  %v1560_v54 = vadd.f32 -0.6931472, %v1525_v46 }
  0x88   :  { %v1013_v4 = vpop.eup %1012  ;;  %v704_v12 = vsub.f32 %v1416_v47, %v1525_v46  ;;  %v705_v11 = vsub.f32 %v1512_v16, %v1550_v1  ;;  %v369_v40 = vmul.f32 %v1003_v41, %v368_v15  ;;  %vm1566_vm1 = vcmp.lt.f32.partialorder %v379_v18, 0.0004427343 }
  0x89   :  { %1922 = vst [vmem:[#allocation31_spill] sm:$0xff] %v1560_v54  ;;  %v538_v0 = vadd.f32 1.0, %v1013_v4  ;;  %v541_v23 = vmul.f32 -0.5, %v1013_v4  ;;  %v1573_v29 = vadd.f32 -0.6931472, %v1550_v1  ;;  %v734_v24 = vmul.f32 %v1531_v55, %v1426_v58 }
  0x8a   :  { %v1015_v50 = vpop.eup %1014  ;;  %v735_v27 = vmul.f32 %v1544_v45, %v1428_v59  ;;  %v378_v60 = vmul.f32 %v1005_v32, %v377_v5  ;;  %v1925_v41 = vmax.f32 %v1337_v17, %v1341_v19  ;;  %v706_v16 = vand.u32 2147483647, %v704_v12 }
  0x8b   :  { %v1570_v14 = vpop.eup %1016  ;;  %v511_v10 = vmul.f32 0.6931472, %v1015_v50  ;;  %1030 = vlog2.f32 %v538_v0  ;;  %v544_v50 = vand.u32 2147483647, %v1013_v4  ;;  %v1587_v1 = vand.u32 2147483647, %v705_v11 }
  0x8c   :  { %v1582_v42 = vadd.f32 %v508_v49, %v1925_v41  ;;  %v547_v15 = vadd.f32 1.0, %v1570_v14  ;;  %v1585_v18 = vpop.eup %1018  ;;  %v1591_v47 = vsub.f32 %v1560_v54, %v1426_v58  ;;  %v542_v17 = vadd.f32 1.0, %v541_v23 }
  0x8d   :  { %v1021_v46 = vpop.eup %1020  ;;  %v517_v32 = vsel %vm1527_vm13, %v514_v30, %v511_v10  ;;  %v578_v19 = vadd.f32 1.0, %v1585_v18  ;;  %v550_v0 = vmul.f32 -0.5, %v1570_v14  ;;  %v1598_v12 = vsub.f32 %v1539_v31, %v734_v24 }
  0x8e   :  { %1032 = vlog2.f32 %v547_v15  ;;  %v326_v49 = vmul.f32 0.6931472, %v1021_v46  ;;  %v1601_v11 = vsub.f32 %v1542_v26, %v735_v27  ;;  %v553_v41 = vand.u32 2147483647, %v1570_v14 }
  0x8f   :  { %v1023_v5 = vpop.eup %1022  ;;  %1034 = vlog2.f32 %v578_v19  ;;  %v581_v44 = vmul.f32 -0.5, %v1585_v18  ;;  %v1926_v46 = vmax.f32 %v1343_v20, %v1347_v25  ;;  %vm1612_vm2 = vcmp.lt.f32.partialorder %v544_v50, 0.0004427343 }
  0x90   :  { %v335_v58 = vmul.f32 0.6931472, %v1023_v5  ;;  %v1025_v30 = vpop.eup %1024  ;;  %v332_v23 = vsel %vm1533_vm14, %v329_v2, %v326_v49  ;;  %v708_v27 = vsub.f32 0.0, %v706_v16  ;;  %v1929_v5 = vmax.f32 %v1398_v33, %v1365_v51 }
  0x91   :  { %v1610_v10 = vadd.f32 %v517_v32, %v1926_v46  ;;  %v366_v28 = vmul.f32 0.6931472, %v1025_v30  ;;  %v543_v2 = vmul.f32 %v1013_v4, %v542_v17  ;;  %v1930_v20 = vmax.f32 %v1409_v6, %v1368_v52 }
  0x92   :  { %v1027_v15 = vpop.eup %1026  ;;  %v341_v19 = vsel %vm1546_vm15, %v338_v61, %v335_v58  ;;  %v342_v54 = vadd.f32 %v332_v23, %v1929_v5  ;;  %v551_v32 = vadd.f32 1.0, %v550_v0  ;;  %v584_v46 = vand.u32 2147483647, %v1585_v18 }
  0x93   :  { %v1029_v49 = vpop.eup %1028  ;;  %v343_v25 = vadd.f32 %v341_v19, %v1930_v20  ;;  %v375_v50 = vmul.f32 0.6931472, %v1027_v15  ;;  %v372_v61 = vsel %vm1552_vm0, %v369_v40, %v366_v28  ;;  %vm1628_vm3 = vcmp.lt.f32.partialorder %v553_v41, 0.0004427343 }
  0x94   :  { %v344_v16 = vsub.f32 %v1517_v43, %v342_v54  ;;  %v582_v51 = vadd.f32 1.0, %v581_v44  ;;  %v587_v33 = vadd.f32 1.0, %v1029_v49  ;;  %v1933_v6 = vmax.f32 %v1424_v7, %v1372_v56 }
  0x95   :  { %v345_v4 = vsub.f32 %v1523_v22, %v343_v25  ;;  %v381_v52 = vsel %vm1566_vm1, %v378_v60, %v375_v50  ;;  %v590_v0 = vmul.f32 -0.5, %v1029_v49  ;;  %v1934_v3 = vmax.f32 %v1431_v62, %v1375_v57  ;;  %v1956_v25 = vld [vmem:[#allocation27_spill] sm:$0xff] }
  0x96   :  { %v382_v17 = vadd.f32 %v372_v61, %v1933_v6  ;;  %vm386_vm4 = vcmp.eq.f32.partialorder %v344_v16, %v344_v16  ;;  %v388_v40 = vand.u32 2147483647, %v344_v16  ;;  %1036 = vlog2.f32 %v587_v33 }
  0x97   :  { %v383_v54 = vadd.f32 %v381_v52, %v1934_v3  ;;  %vm387_vm5 = vcmp.eq.f32.partialorder %v345_v4, %v345_v4  ;;  %v389_v41 = vand.u32 2147483647, %v345_v4  ;;  %v710_v44 = vmul.f32 1.442695, %v708_v27 }
  0x98   :  { %v384_v58 = vsub.f32 %v1517_v43, %v382_v17  ;;  %vm390_vm7 = vcmp.lt.f32.partialorder %v388_v40, inf  ;;  %v593_v60 = vand.u32 2147483647, %v1029_v49  ;;  %v709_v56 = vsub.f32 0.0, %v1587_v1  ;;  %v1031_v7 = vpop.eup %1030 }
  0x99   :  { %v385_v8 = vsub.f32 %v1523_v22, %v383_v54  ;;  %vm391_vm10 = vcmp.lt.f32.partialorder %v389_v41, inf  ;;  %vm1644_vm11 = vmand %vm386_vm4, %vm390_vm7  ;;  %v552_v62 = vmul.f32 %v1570_v14, %v551_v32  ;;  %v591_v23 = vadd.f32 1.0, %v590_v0 }
  0x9a   :  { %v398_v57 = vand.u32 2147483647, %v384_v58  ;;  %vm1649_vm12 = vmand %vm387_vm5, %vm391_vm10  ;;  %vm396_vm13 = vcmp.eq.f32.partialorder %v384_v58, %v384_v58  ;;  %v540_v27 = vmul.f32 0.6931472, %v1031_v7  ;;  %vm1653_vm14 = vcmp.lt.f32.partialorder %v584_v46, 0.0004427343 }
  0x9b   :  { %v399_v22 = vand.u32 2147483647, %v385_v8  ;;  %v1033_v1 = vpop.eup %1032  ;;  %vm394_vm15 = vmand %vm1644_vm11, %vm1298_vm8  ;;  %vm397_vm0 = vcmp.eq.f32.partialorder %v385_v8, %v385_v8  ;;  %v583_v14 = vmul.f32 %v1585_v18, %v582_v51  ;;  %1038 = vpow2.f32 %v710_v44 }
  0x9c   :  { %vm400_vm1 = vcmp.lt.f32.partialorder %v398_v57, inf  ;;  %vm395_vm4 = vmand %vm1649_vm12, %vm1311_vm9  ;;  %v546_v19 = vsel %vm1612_vm2, %v543_v2, %v540_v27  ;;  %vm1668_vm7 = vcmp.lt.f32.partialorder %v593_v60, 0.0004427343  ;;  %v712_v28 = vmul.f32 1.442695, %v709_v56  ;;  %v1035_v20 = vpop.eup %1034 }
  0x9d   :  { %vm401_vm5 = vcmp.lt.f32.partialorder %v399_v22, inf  ;;  %vm1673_vm10 = vmand %vm396_vm13, %vm400_vm1  ;;  %v549_v18 = vmul.f32 0.6931472, %v1033_v1  ;;  %v1945_v50 = vmax.f32 %v1459_v53, %v1386_v9  ;;  %v592_v46 = vmul.f32 %v1029_v49, %v591_v23 }
  0x9e   :  { %v1682_v24 = vsub.f32 %v1573_v29, %v1428_v59  ;;  %vm1685_vm2 = vmand %vm397_vm0, %vm401_vm5  ;;  %v1948_v61 = vmov 0.0   ;;  %v406_v9 = vsel %vm394_vm15, %v344_v16, 0.0  ;;  %v580_v59 = vmul.f32 0.6931472, %v1035_v20 }
  0x9f   :  { %v556_v32 = vadd.f32 %v546_v19, %v1945_v50  ;;  %v913_v51 = vsel %vm394_vm15, 1.0, %v1948_v61  ;;  %v742_v53 = vsub.f32 %v1598_v12, %v1591_v47  ;;  %vm404_vm13 = vmand %vm1673_vm10, %vm1298_vm8  ;;  %v914_v49 = vsel %vm395_vm4, 1.0, %v1948_v61 }
  0xa0   :  { %v407_v16 = vsel %vm395_vm4, %v345_v4, 0.0  ;;  %v555_v33 = vsel %vm1628_vm3, %v552_v62, %v549_v18  ;;  %vm405_vm11 = vmand %vm1685_vm2, %vm1311_vm9  ;;  %v915_v6 = vsel %vm404_vm13, 1.0, %v1948_v61  ;;  %v408_v17 = vsel %vm404_vm13, %v384_v58, 0.0 }
  0xa1   :  { %v558_v52 = vsub.f32 %v1582_v42, %v556_v32  ;;  %v1949_v0 = vmax.f32 %v1463_v37, %v1390_v13  ;;  %v586_v4 = vsel %vm1653_vm14, %v583_v14, %v580_v59  ;;  %v916_v21 = vsel %vm405_vm11, 1.0, %v1948_v61 }
  0xa2   :  { %v432_v54 = vadd.f32 %v915_v6, %v913_v51  ;;  %v409_v40 = vsel %vm405_vm11, %v385_v8, 0.0  ;;  %v410_v41 = vadd.f32 %v408_v17, %v406_v9  ;;  %v433_v44 = vadd.f32 %v916_v21, %v914_v49  ;;  %v1957_v6 = vld [vmem:[#allocation31_spill] sm:$0xff] }
  0xa3   :  { %v557_v3 = vadd.f32 %v555_v33, %v1949_v0  ;;  %v411_v60 = vadd.f32 %v409_v40, %v407_v16  ;;  %v1950_v7 = vmax.f32 %v1468_v38, %v1402_v48  ;;  %v1037_v30 = vpop.eup %1036  ;;  %vm600_vm3 = vcmp.eq.f32.partialorder %v558_v52, %v558_v52 }
  0xa4   :  { %v434_v13 = vsel %vm223_vm6, %v432_v54, 0.0  ;;  %v412_v37 = vsel %vm223_vm6, %v410_v41, 0.0  ;;  %v602_v57 = vand.u32 2147483647, %v558_v52  ;;  %v435_v62 = vsel %vm223_vm6, %v433_v44, 0.0 }
  0xa5   :  { %v559_v56 = vsub.f32 %v1610_v10, %v557_v3  ;;  %v596_v58 = vadd.f32 %v586_v4, %v1950_v7  ;;  %v413_v8 = vsel %vm223_vm6, %v411_v60, 0.0  ;;  %v589_v23 = vmul.f32 0.6931472, %v1037_v30 }
  0xa6   :  { %v436_v22 = vadd.f32 %v435_v62, %v434_v13  ;;  %v414_v27 = vadd.f32 %v413_v8, %v412_v37  ;;  %vm604_vm14 = vcmp.lt.f32.partialorder %v602_v57, inf  ;;  %1040 = vpow2.f32 %v712_v28 }
  0xa7   :  { %v598_v43 = vsub.f32 %v1582_v42, %v596_v58  ;;  %vm601_vm12 = vcmp.eq.f32.partialorder %v559_v56, %v559_v56  ;;  %v603_v15 = vand.u32 2147483647, %v559_v56  ;;  %v595_v48 = vsel %vm1668_vm7, %v592_v46, %v589_v23  ;;  %vm1746_vm0 = vmand %vm600_vm3, %vm604_vm14 }
  0xa8   :  { %437 = vadd.xlane.f32.xlu1 %v436_v22  ;;  %415 = vadd.xlane.f32.xlu0 %v414_v27  ;;  %v1951_v1 = vmax.f32 %v1474_v35, %v1414_v36  ;;  %v1750_v19 = vpop.eup %1038  ;;  %v743_v28 = vsub.f32 %v1601_v11, %v1682_v24  ;;  %vm608_vm7 = vmand %vm1746_vm0, %vm1298_vm8  ;;  %v744_v35 = vand.u32 2147483647, %v742_v53  ;;  %v774_v20 = vmul.f32 %v1531_v55, %v1433_v63 }
  0xa9   :  { %v612_v38 = vand.u32 2147483647, %v598_v43  ;;  %vm605_vm15 = vcmp.lt.f32.partialorder %v603_v15, inf  ;;  %vm610_vm4 = vcmp.eq.f32.partialorder %v598_v43, %v598_v43  ;;  %v775_v18 = vmul.f32 %v1544_v45, %v1956_v25 }
  0xaa   :  { %v597_v14 = vadd.f32 %v595_v48, %v1951_v1  ;;  %vm1752_vm1 = vmand %vm601_vm12, %vm605_vm15  ;;  %v921_v32 = vsel %vm608_vm7, 1.0, %v1948_v61  ;;  %v745_v2 = vand.u32 2147483647, %v743_v28  ;;  %v746_v51 = vsub.f32 0.0, %v744_v35 }
  0xab   :  { %vm614_vm5 = vcmp.lt.f32.partialorder %v612_v38, inf  ;;  %vm609_vm10 = vmand %vm1752_vm1, %vm1311_vm9  ;;  %v1789_v33 = vsub.f32 %v1539_v31, %v774_v20  ;;  %v1796_v17 = vsub.f32 %v1957_v6, %v1433_v63  ;;  %v1803_v31 = vsub.f32 %v1573_v29, %v1956_v25 }
  0xac   :  { %v599_v36 = vsub.f32 %v1610_v10, %v597_v14  ;;  %vm616_vm13 = vmand %vm610_vm4, %vm614_vm5  ;;  %v620_v10 = vsel %vm608_vm7, %v558_v52, 0.0  ;;  %v621_v46 = vsel %vm609_vm10, %v559_v56, 0.0  ;;  %v922_v59 = vsel %vm609_vm10, 1.0, %v1948_v61 }
  0xad   :  { %vm618_vm11 = vmand %vm616_vm13, %vm1298_vm8  ;;  %v747_v49 = vsub.f32 0.0, %v745_v2  ;;  %v748_v16 = vmul.f32 1.442695, %v746_v51  ;;  %v1792_v52 = vsub.f32 %v1542_v26, %v775_v18  ;;  %v782_v26 = vsub.f32 %v1789_v33, %v1796_v17 }
  0xae   :  { %vm611_vm2 = vcmp.eq.f32.partialorder %v599_v36, %v599_v36  ;;  %v613_v50 = vand.u32 2147483647, %v599_v36  ;;  %v622_v55 = vsel %vm618_vm11, %v598_v43, 0.0  ;;  %v923_v45 = vsel %vm618_vm11, 1.0, %v1948_v61 }
  0xaf   :  { %v624_v9 = vadd.f32 %v622_v55, %v620_v10  ;;  %v646_v53 = vadd.f32 %v923_v45, %v921_v32  ;;  %1042 = vpow2.f32 %v748_v16  ;;  %v750_v41 = vmul.f32 1.442695, %v747_v49  ;;  %v1961_v49 = vld [vmem:[#allocation26_spill] sm:$0xff] }
  0xb0   :  { %vm615_vm3 = vcmp.lt.f32.partialorder %v613_v50, inf  ;;  %v783_v58 = vsub.f32 %v1792_v52, %v1803_v31  ;;  %v714_v30 = vadd.f32 1.0, %v1750_v19  ;;  %v784_v13 = vand.u32 2147483647, %v782_v26 }
  0xb1   :  { %vm617_vm12 = vmand %vm611_vm2, %vm615_vm3  ;;  %v626_v3 = vsel %vm223_vm6, %v624_v9, 0.0  ;;  %v648_v21 = vsel %vm223_vm6, %v646_v53, 0.0  ;;  %1044 = vpow2.f32 %v750_v41  ;;  %v717_v15 = vmul.f32 -0.5, %v1750_v19  ;;  %v1960_v53 = vld [vmem:[#allocation29_spill] sm:$0xff] }
  0xb2   :  { %vm619_vm14 = vmand %vm617_vm12, %vm1311_vm9  ;;  %v785_v37 = vand.u32 2147483647, %v783_v58  ;;  %v786_v57 = vsub.f32 0.0, %v784_v13  ;;  %1046 = vlog2.f32 %v714_v30  ;;  %v720_v5 = vand.u32 2147483647, %v1750_v19 }
  0xb3   :  { %v623_v0 = vsel %vm619_vm14, %v599_v36, 0.0  ;;  %v924_v4 = vsel %vm619_vm14, 1.0, %v1948_v61  ;;  %v1041_v63 = vpop.eup %1040  ;;  %v718_v1 = vadd.f32 1.0, %v717_v15  ;;  %v702_v16 = vmax.f32 %v1961_v49, %v1960_v53 }
  0xb4   :  { %v625_v54 = vadd.f32 %v623_v0, %v621_v46  ;;  %v647_v40 = vadd.f32 %v924_v4, %v922_v59  ;;  %v723_v29 = vadd.f32 1.0, %v1041_v63  ;;  %v787_v62 = vsub.f32 0.0, %v785_v37 }
  0xb5   :  { %v788_v8 = vmul.f32 1.442695, %v786_v57  ;;  %v726_v38 = vmul.f32 -0.5, %v1041_v63  ;;  %v729_v25 = vand.u32 2147483647, %v1041_v63  ;;  %v719_v10 = vmul.f32 %v1750_v19, %v718_v1 }
  0xb6   :  { %v627_v44 = vsel %vm223_vm6, %v625_v54, 0.0  ;;  %v649_v60 = vsel %vm223_vm6, %v647_v40, 0.0  ;;  %1048 = vlog2.f32 %v723_v29  ;;  %v790_v23 = vmul.f32 1.442695, %v787_v62  ;;  %v1965_v54 = vld [vmem:[#allocation28_spill] sm:$0xff] }
  0xb7   :  { %v628_v56 = vadd.f32 %v627_v44, %v626_v3  ;;  %v650_v7 = vadd.f32 %v649_v60, %v648_v21  ;;  %1050 = vpow2.f32 %v788_v8  ;;  %v727_v36 = vadd.f32 1.0, %v726_v38  ;;  %v1964_v21 = vld [vmem:[#allocation30_spill] sm:$0xff] }
  0xb8   :  { %1052 = vpow2.f32 %v790_v23  ;;  %vm1815_vm15 = vcmp.lt.f32.partialorder %v720_v5, 0.0004427343  ;;  %vm1821_vm0 = vcmp.lt.f32.partialorder %v729_v25, 0.0004427343  ;;  %v703_v40 = vmax.f32 %v1965_v54, %v1964_v21 }
  0xb9   :  { %629 = vadd.xlane.f32.xlu1 %v628_v56  ;;  %651 = vadd.xlane.f32.xlu0 %v650_v7  ;;  %v728_v9 = vmul.f32 %v1041_v63, %v727_v36  ;;  %v740_v41 = vmax.f32 %v1598_v12, %v1591_v47  ;;  %v741_v58 = vmax.f32 %v1601_v11, %v1682_v24 }
  0xba   :  { %v780_v11 = vmax.f32 %v1789_v33, %v1796_v17 }
  0xbc   :  { %v1043_v43 = vpop.eup %1042 }
  0xbd   :  { %v752_v22 = vadd.f32 1.0, %v1043_v43  ;;  %v755_v14 = vmul.f32 -0.5, %v1043_v43  ;;  %v758_v55 = vand.u32 2147483647, %v1043_v43 }
  0xbe   :  { %v1045_v27 = vpop.eup %1044 }
  0xbf   :  { %1054 = vlog2.f32 %v752_v22  ;;  %v761_v48 = vadd.f32 1.0, %v1045_v27  ;;  %v1047_v42 = vpop.eup %1046  ;;  %v764_v35 = vmul.f32 -0.5, %v1045_v27  ;;  %v756_v32 = vadd.f32 1.0, %v755_v14 }
  0xc0   :  { %v716_v50 = vmul.f32 0.6931472, %v1047_v42  ;;  %v767_v19 = vand.u32 2147483647, %v1045_v27  ;;  %vm759_vm1 = vcmp.lt.f32.partialorder %v758_v55, 0.0004427343  ;;  %v781_v42 = vmax.f32 %v1792_v52, %v1803_v31 }
  0xc1   :  { %1056 = vlog2.f32 %v761_v48  ;;  %v765_v59 = vadd.f32 1.0, %v764_v35  ;;  %v757_v3 = vmul.f32 %v1043_v43, %v756_v32 }
  0xc2   :  { %v722_v0 = vsel %vm1815_vm15, %v719_v10, %v716_v50  ;;  %vm768_vm4 = vcmp.lt.f32.partialorder %v767_v19, 0.0004427343 }
  0xc3   :  { %v1049_v28 = vpop.eup %1048  ;;  %v766_v44 = vmul.f32 %v1045_v27, %v765_v59  ;;  %v732_v7 = vadd.f32 %v722_v0, %v702_v16 }
  0xc4   :  { %v1051_v20 = vpop.eup %1050  ;;  %v725_v51 = vmul.f32 0.6931472, %v1049_v28 }
  0xc5   :  { %v1053_v18 = vpop.eup %1052  ;;  %v792_v46 = vadd.f32 1.0, %v1051_v20  ;;  %v795_v60 = vmul.f32 -0.5, %v1051_v20  ;;  %v798_v23 = vand.u32 2147483647, %v1051_v20 }
  0xc6   :  { %v801_v45 = vadd.f32 1.0, %v1053_v18  ;;  %v731_v26 = vsel %vm1821_vm0, %v728_v9, %v725_v51  ;;  %v804_v30 = vmul.f32 -0.5, %v1053_v18  ;;  %v807_v22 = vand.u32 2147483647, %v1053_v18 }
  0xc7   :  { %1058 = vlog2.f32 %v792_v46  ;;  %v733_v37 = vadd.f32 %v731_v26, %v703_v40  ;;  %v796_v47 = vadd.f32 1.0, %v795_v60  ;;  %vm799_vm5 = vcmp.lt.f32.partialorder %v798_v23, 0.0004427343 }
  0xc8   :  { %1060 = vlog2.f32 %v801_v45  ;;  %v805_v43 = vadd.f32 1.0, %v804_v30  ;;  %vm808_vm7 = vcmp.lt.f32.partialorder %v807_v22, 0.0004427343 }
  0xc9   :  { %v797_v15 = vmul.f32 %v1051_v20, %v796_v47 }
  0xca   :  { %v806_v24 = vmul.f32 %v1053_v18, %v805_v43 }
  0xcc   :  { %v1055_v4 = vpop.eup %1054 }
  0xcd   :  { %v754_v63 = vmul.f32 0.6931472, %v1055_v4 }
  0xce   :  { %v1057_v56 = vpop.eup %1056 }
  0xcf   :  { %v760_v13 = vsel %vm759_vm1, %v757_v3, %v754_v63  ;;  %v763_v29 = vmul.f32 0.6931472, %v1057_v56 }
  0xd0   :  { %v770_v57 = vadd.f32 %v760_v13, %v740_v41 }
  0xd1   :  { %v769_v62 = vsel %vm768_vm4, %v766_v44, %v763_v29 }
  0xd2   :  { %v771_v12 = vadd.f32 %v769_v62, %v741_v58  ;;  %v772_v8 = vsub.f32 %v732_v7, %v770_v57 }
  0xd4   :  { %v773_v27 = vsub.f32 %v733_v37, %v771_v12  ;;  %v816_v48 = vand.u32 2147483647, %v772_v8  ;;  %v1059_v38 = vpop.eup %1058  ;;  %vm814_vm10 = vcmp.eq.f32.partialorder %v772_v8, %v772_v8 }
  0xd5   :  { %v1061_v14 = vpop.eup %1060  ;;  %v794_v5 = vmul.f32 0.6931472, %v1059_v38 }
  0xd6   :  { %v817_v1 = vand.u32 2147483647, %v773_v27  ;;  %v803_v28 = vmul.f32 0.6931472, %v1061_v14  ;;  %vm818_vm2 = vcmp.lt.f32.partialorder %v816_v48, inf  ;;  %vm815_vm13 = vcmp.eq.f32.partialorder %v773_v27, %v773_v27 }
  0xd7   :  { %v800_v36 = vsel %vm799_vm5, %v797_v15, %v794_v5  ;;  %vm1839_vm3 = vmand %vm814_vm10, %vm818_vm2 }
  0xd8   :  { %v809_v35 = vsel %vm808_vm7, %v806_v24, %v803_v28  ;;  %v810_v20 = vadd.f32 %v800_v36, %v780_v11  ;;  %vm819_vm11 = vcmp.lt.f32.partialorder %v817_v1, inf  ;;  %vm822_vm15 = vmand %vm1839_vm3, %vm1298_vm8 }
  0xd9   :  { %v811_v25 = vadd.f32 %v809_v35, %v781_v42  ;;  %vm1843_vm12 = vmand %vm815_vm13, %vm819_vm11  ;;  %v834_v2 = vsel %vm822_vm15, %v772_v8, 0.0  ;;  %v929_v55 = vsel %vm822_vm15, 1.0, %v1948_v61 }
  0xda   :  { %v812_v50 = vsub.f32 %v732_v7, %v810_v20  ;;  %vm823_vm1 = vmand %vm1843_vm12, %vm1311_vm9 }
  0xdb   :  { %v813_v17 = vsub.f32 %v733_v37, %v811_v25  ;;  %v835_v51 = vsel %vm823_vm1, %v773_v27, 0.0  ;;  %v930_v9 = vsel %vm823_vm1, 1.0, %v1948_v61 }
  0xdc   :  { %vm824_vm14 = vcmp.eq.f32.partialorder %v812_v50, %v812_v50  ;;  %v826_v31 = vand.u32 2147483647, %v812_v50 }
  0xdd   :  { %vm825_vm0 = vcmp.eq.f32.partialorder %v813_v17, %v813_v17  ;;  %v827_v32 = vand.u32 2147483647, %v813_v17 }
  0xde   :  { %vm828_vm4 = vcmp.lt.f32.partialorder %v826_v31, inf }
  0xdf   :  { %vm829_vm5 = vcmp.lt.f32.partialorder %v827_v32, inf  ;;  %vm830_vm7 = vmand %vm824_vm14, %vm828_vm4 }
  0xe0   :  { %vm831_vm10 = vmand %vm825_vm0, %vm829_vm5 }
  0xe1   :  { %v228_v52 = vpop.xlane.xlu0 %227  ;;  %vm832_vm2 = vmand %vm830_vm7, %vm1298_vm8 }
  0xe2   :  { %v229_v10 = vrot.slane %v228_v52, 4  ;;  %vm833_vm13 = vmand %vm831_vm10, %vm1311_vm9  ;;  %v836_v59 = vsel %vm832_vm2, %v812_v50, 0.0  ;;  %v931_v53 = vsel %vm832_vm2, 1.0, %v1948_v61 }
  0xe3   :  { %v837_v16 = vsel %vm833_vm13, %v813_v17, 0.0  ;;  %v838_v6 = vadd.f32 %v836_v59, %v834_v2  ;;  %v932_v19 = vsel %vm833_vm13, 1.0, %v1948_v61  ;;  %v860_v0 = vadd.f32 %v931_v53, %v929_v55  ;;  %v1970_v2 = vld [vmem:[#allocation25_spill] sm:$0xff] }
  0xe4   :  { %v230_v46 = vadd.f32 %v229_v10, %v228_v52  ;;  %v839_v3 = vadd.f32 %v837_v16, %v835_v51  ;;  %v861_v4 = vadd.f32 %v932_v19, %v930_v9  ;;  %vm236_vm8 = vcmp.eq.s32.totalorder %v1970_v2, 6 }
  0xe5   :  { %v840_v34 = vsel %vm223_vm6, %v838_v6, 0.0  ;;  %v862_v54 = vsel %vm223_vm6, %v860_v0, 0.0  ;;  %vm450_vm9 = vcmp.eq.s32.totalorder %v1970_v2, 3  ;;  %vm660_vm11 = vcmp.eq.s32.totalorder %v1970_v2, 1 }
  0xe6   :  { %v231_v45 = vrot.slane %v230_v46, 2  ;;  %v841_v40 = vsel %vm223_vm6, %v839_v3, 0.0  ;;  %v863_v39 = vsel %vm223_vm6, %v861_v4, 0.0  ;;  %vm446_vm6 = vcmp.eq.s32.totalorder %v1970_v2, 0 }
  0xe7   :  { %v842_v26 = vadd.f32 %v841_v40, %v840_v34  ;;  %v864_v63 = vadd.f32 %v863_v39, %v862_v54  ;;  %vm664_vm3 = vcmp.eq.s32.totalorder %v1970_v2, 4  ;;  %vm874_vm12 = vcmp.eq.s32.totalorder %v1970_v2, 2 }
  0xe8   :  { %v232_v49 = vadd.f32 %v231_v45, %v230_v46  ;;  %vm878_vm14 = vcmp.eq.s32.totalorder %v1970_v2, 5 }
  0xe9   :  { %843 = vadd.xlane.f32.xlu1 %v842_v26  ;;  %865 = vadd.xlane.f32.xlu0 %v864_v63 }
  0xea   :  { %v233_v21 = vrot.slane %v232_v49, 1 }
  0xec   :  { %v234_v41 = vadd.f32 %v233_v21, %v232_v49 }
  0xee   :  { %933 = vpush %v234_v41 }
 0x11f   :  { %s934_s6 = spop %933 }
 0x120   :  { %v237_v45 = vstv %s934_s6 }
 0x121   :  { %v238_v9 = vsel %vm236_vm8, %v237_v45, 0.0 }
 0x131   :  { %v438_v44 = vpop.xlane.xlu1 %437  ;;  %v416_v61 = vpop.xlane.xlu0 %415 }
 0x132   :  { %v439_v60 = vrot.slane %v438_v44, 4  ;;  %v417_v56 = vrot.slane %v416_v61, 4 }
 0x134   :  { %v440_v7 = vadd.f32 %v439_v60, %v438_v44  ;;  %v418_v58 = vadd.f32 %v417_v56, %v416_v61 }
 0x136   :  { %v441_v30 = vrot.slane %v440_v7, 2  ;;  %v419_v13 = vrot.slane %v418_v58, 2 }
 0x138   :  { %v420_v29 = vadd.f32 %v419_v13, %v418_v58  ;;  %v442_v37 = vadd.f32 %v441_v30, %v440_v7 }
 0x13a   :  { %v421_v57 = vrot.slane %v420_v29, 1  ;;  %v443_v62 = vrot.slane %v442_v37, 1 }
 0x13c   :  { %v422_v47 = vadd.f32 %v421_v57, %v420_v29  ;;  %v444_v12 = vadd.f32 %v443_v62, %v442_v37 }
 0x13e   :  { %935 = vpush %v422_v47 }
 0x13f   :  { %937 = vpush %v444_v12 }
 0x142   :  { %v630_v8 = vpop.xlane.xlu1 %629  ;;  %v652_v23 = vpop.xlane.xlu0 %651 }
 0x143   :  { %v631_v43 = vrot.slane %v630_v8, 4  ;;  %v653_v22 = vrot.slane %v652_v23, 4 }
 0x145   :  { %v632_v27 = vadd.f32 %v631_v43, %v630_v8  ;;  %v654_v15 = vadd.f32 %v653_v22, %v652_v23 }
 0x147   :  { %v633_v48 = vrot.slane %v632_v27, 2  ;;  %v655_v38 = vrot.slane %v654_v15, 2 }
 0x149   :  { %v634_v11 = vadd.f32 %v633_v48, %v632_v27  ;;  %v656_v24 = vadd.f32 %v655_v38, %v654_v15 }
 0x14b   :  { %v635_v1 = vrot.slane %v634_v11, 1  ;;  %v657_v14 = vrot.slane %v656_v24, 1 }
 0x14d   :  { %v636_v42 = vadd.f32 %v635_v1, %v634_v11  ;;  %v658_v5 = vadd.f32 %v657_v14, %v656_v24 }
 0x14f   :  { %939 = vpush %v636_v42 }
 0x150   :  { %941 = vpush %v658_v5 }
 0x16f   :  { %s936_s7 = spop %935 }
 0x170   :  { %v447_v55 = vstv %s936_s7  ;;  %s938_s3 = spop %937 }
 0x171   :  { %v448_v51 = vsel %vm446_vm6, %v447_v55, 0.0  ;;  %v451_v53 = vstv %s938_s3 }
 0x172   :  { %v844_v28 = vpop.xlane.xlu1 %843  ;;  %v866_v36 = vpop.xlane.xlu0 %865  ;;  %v449_v59 = vadd.f32 %v448_v51, %v238_v9  ;;  %v452_v16 = vsel %vm450_vm9, %v451_v53, 0.0 }
 0x173   :  { %v845_v35 = vrot.slane %v844_v28, 4  ;;  %v867_v20 = vrot.slane %v866_v36, 4 }
 0x174   :  { %v453_v6 = vadd.f32 %v452_v16, %v449_v59 }
 0x175   :  { %v846_v25 = vadd.f32 %v845_v35, %v844_v28  ;;  %v868_v50 = vadd.f32 %v867_v20, %v866_v36 }
 0x177   :  { %v847_v33 = vrot.slane %v846_v25, 2  ;;  %v869_v17 = vrot.slane %v868_v50, 2 }
 0x179   :  { %v848_v18 = vadd.f32 %v847_v33, %v846_v25  ;;  %v870_v52 = vadd.f32 %v869_v17, %v868_v50 }
 0x17b   :  { %v849_v31 = vrot.slane %v848_v18, 1  ;;  %v871_v10 = vrot.slane %v870_v52, 1 }
 0x17d   :  { %v850_v32 = vadd.f32 %v849_v31, %v848_v18  ;;  %v872_v46 = vadd.f32 %v871_v10, %v870_v52 }
 0x17f   :  { %943 = vpush %v850_v32 }
 0x180   :  { %945 = vpush %v872_v46  ;;  %s940_s22 = spop %939 }
 0x181   :  { %v661_v49 = vstv %s940_s22  ;;  %s942_s23 = spop %941 }
 0x182   :  { %v662_v19 = vsel %vm660_vm11, %v661_v49, 0.0  ;;  %v665_v3 = vstv %s942_s23 }
 0x183   :  { %v663_v0 = vadd.f32 %v662_v19, %v453_v6  ;;  %v666_v4 = vsel %vm664_vm3, %v665_v3, 0.0 }
 0x185   :  { %v667_v21 = vadd.f32 %v666_v4, %v663_v0 }
 0x1b0   :  { %s944_s24 = spop %943 }
 0x1b1   :  { %v875_v34 = vstv %s944_s24  ;;  %s946_s0 = spop %945 }
 0x1b2   :  { %v876_v54 = vsel %vm874_vm12, %v875_v34, 0.0  ;;  %v879_v40 = vstv %s946_s0 }
 0x1b3   :  { %v877_v39 = vadd.f32 %v876_v54, %v667_v21  ;;  %v880_v41 = vsel %vm878_vm14, %v879_v40, 0.0 }
 0x1b5   :  { %v881_v26 = vadd.f32 %v880_v41, %v877_v39 }
 0x1b7   :  { %882 = vst [vmem:[#allocation13] sm:$0x1] %v881_v26 }
 0x1b8   :  { %1133 = shalt.err (!%p1130_p5)
}
 0x1b9   :  { %892 = dma.vmem_to_hbm [thread:$0]  %s890_s26, 16, %s1885_s8, [#allocation4]  }
 0x1ba   :  { %1150 = dma.done.wait [#allocation4], 16  }
 0x1bb   :  { %1151 = vsyncadd [#allocation4], 4294967280 }
 0x1bc   :  { %896 = vsyncpa [#allocation3], 1 }
 0x1bd   :  { %897 = vsyncpa [#allocation6], 1 }
 0x1be   :  { %898 = vsyncpa [#allocation9], 1 }
 0x1bf   :  { %899 = vsyncpa [#allocation12], 1 }
 0x1c0   :  { %900 = vsyncpa [#allocation4], 1 }

</bundles_post_ra>
